<compile_context>
chip_gen: v6e
topology: v6e:2x2x1
jax: 0.10.0
libtpu: 0.0.40
codegen_flags: <defaults>
</compile_context>

<pallas_src>
import functools
import math

import numpy as np

import jax
import jax.numpy as jnp
from jax.experimental import pallas as pl
from jax.experimental.pallas import tpu as pltpu


_VMEM_LIMIT = 48 * 1024 * 1024   # explicit scoped-VMEM limit (fits v7x's 64 MiB)

CATEGORY_ORDER = ("surface", "edaphic", "atmos", "climate", "species",
                  "vegetation", "land", "agriculture", "forest", "redlist", "misc")


# ----------------------------------------------------------------------------
# Capability probe: exact (erf) GELU if Mosaic can lower lax.erf, else tanh.
# ----------------------------------------------------------------------------
@functools.lru_cache(maxsize=1)
def _exact_gelu_supported():
    try:
        def k(x_ref, o_ref):
            o_ref[...] = jax.lax.erf(x_ref[...])
        f = pl.pallas_call(k, out_shape=jax.ShapeDtypeStruct((8, 128), jnp.float32))
        jax.block_until_ready(f(jnp.zeros((8, 128), jnp.float32)))
        return True
    except Exception:
        return False


def _gelu(h, exact):
    if exact:
        # exact erf GELU — matches torch.nn.GELU default.
        return 0.5 * h * (1.0 + jax.lax.erf(h * (1.0 / math.sqrt(2.0))))
    # TODO(synk): tanh-approx fallback when lax.erf has no Mosaic lowering;
    # differs slightly from torch.nn.GELU's exact erf form.
    return jax.nn.gelu(h, approximate=True)


# ----------------------------------------------------------------------------
# In-kernel helpers (operate on jnp arrays / refs inside a kernel body).
# ----------------------------------------------------------------------------
def _layernorm_f32(v, ln_ref, eps):
    g = ln_ref[0].astype(jnp.float32)
    b = ln_ref[1].astype(jnp.float32)
    mu = jnp.mean(v, axis=-1, keepdims=True)
    var = jnp.mean((v - mu) ** 2, axis=-1, keepdims=True)
    return (v - mu) * jax.lax.rsqrt(var + eps) * g + b


def _gqa_attention(q, k, v, wo_ref, bo_ref, attn_sc, *, heads, kv_heads, head_dim):
    """q (Tq, Hd), k/v (Tk, Kd) f32 -> output-projected (Tq, D) f32.

    One scores matmul and one PV matmul per kv-head group (rep query heads stacked
    along rows); results written into a (Tq, Hd) VMEM scratch at static offsets.
    """
    Tq = q.shape[0]
    dh = head_dim
    rep = heads // kv_heads
    gw = rep * dh                                   # query-column width per kv group
    scale = 1.0 / math.sqrt(dh)

    # hoist bf16 casts (one pack per tensor, not per group / per head)
    q_bf = q.astype(jnp.bfloat16)
    k_bf = k.astype(jnp.bfloat16)
    v_bf = v.astype(jnp.bfloat16)

    for g in range(kv_heads):
        qg = q_bf[:, g * gw:(g + 1) * gw].reshape(Tq, rep, dh)
        qg = jnp.swapaxes(qg, 0, 1).reshape(rep * Tq, dh)          # (rep*Tq, dh)
        kg = k_bf[:, g * dh:(g + 1) * dh]                          # (Tk, dh)
        vg = v_bf[:, g * dh:(g + 1) * dh]

        # scores: (rep*Tq, dh) x (Tk, dh) contracted on dh — K fed in natural layout.
        s = jax.lax.dot_general(qg, kg, (((1,), (1,)), ((), ())),
                                preferred_element_type=jnp.float32) * scale
        m = jnp.max(s, axis=-1, keepdims=True)
        p = jnp.exp(s - m)
        p = p / jnp.sum(p, axis=-1, keepdims=True)                 # exact softmax
        og = jnp.dot(p.astype(jnp.bfloat16), vg,
                     preferred_element_type=jnp.float32)           # (rep*Tq, dh)
        og = jnp.swapaxes(og.reshape(rep, Tq, dh), 0, 1).reshape(Tq, gw)
        attn_sc[:, g * gw:(g + 1) * gw] = og

    out = attn_sc[...]
    return (jnp.dot(out.astype(jnp.bfloat16), wo_ref[...],
                    preferred_element_type=jnp.float32)
            + bo_ref[...].astype(jnp.float32))


def _ffn_f32(x, ln_ref, w1_ref, b1_ref, w2_ref, b2_ref, eps, exact_gelu):
    h = _layernorm_f32(x, ln_ref, eps).astype(jnp.bfloat16)
    h = jnp.dot(h, w1_ref[...], preferred_element_type=jnp.float32) + b1_ref[...]
    h = _gelu(h, exact_gelu)
    return jnp.dot(h.astype(jnp.bfloat16), w2_ref[...],
                   preferred_element_type=jnp.float32) + b2_ref[...]


# ----------------------------------------------------------------------------
# Fused transformer-block kernels (one pallas_call per block, grid over batch).
# ----------------------------------------------------------------------------
def _self_block_kernel(x_ref, ln1_ref, wqkv_ref, bqkv_ref, wo_ref, bo_ref,
                       ln2_ref, w1_ref, b1_ref, w2_ref, b2_ref,
                       o_ref, attn_sc, *, heads, kv_heads, head_dim, eps, exact_gelu):
    Hd = heads * head_dim
    Kd = kv_heads * head_dim
    x = x_ref[0].astype(jnp.float32)                               # (T, D)

    # single LN + single fused QKV matmul (self-attention: q-side == ctx-side)
    h = _layernorm_f32(x, ln1_ref, eps).astype(jnp.bfloat16)
    qkv = (jnp.dot(h, wqkv_ref[...], preferred_element_type=jnp.float32)
           + bqkv_ref[...].astype(jnp.float32))
    y = _gqa_attention(qkv[:, :Hd], qkv[:, Hd:Hd + Kd], qkv[:, Hd + Kd:],
                       wo_ref, bo_ref, attn_sc,
                       heads=heads, kv_heads=kv_heads, head_dim=head_dim)
    x = x + y                                                       # attn residual

    y2 = _ffn_f32(x, ln2_ref, w1_ref, b1_ref, w2_ref, b2_ref, eps, exact_gelu)
    o_ref[0] = (x + y2).astype(o_ref.dtype)                        # ffn residual


def _cross_block_kernel(xq_ref, xc_ref, lnq_ref, lnc_ref,
                        wq_ref, bq_ref, wkv_ref, bkv_ref, wo_ref, bo_ref,
                        ln2_ref, w1_ref, b1_ref, w2_ref, b2_ref,
                        o_ref, attn_sc, *, heads, kv_heads, head_dim, eps, exact_gelu):
    Kd = kv_heads * head_dim
    xq = xq_ref[0].astype(jnp.float32)                             # (Tq, D)
    xc = xc_ref[0].astype(jnp.float32)                             # (Tk, D)

    hq = _layernorm_f32(xq, lnq_ref, eps).astype(jnp.bfloat16)
    hc = _layernorm_f32(xc, lnc_ref, eps).astype(jnp.bfloat16)
    q = (jnp.dot(hq, wq_ref[...], preferred_element_type=jnp.float32)
         + bq_ref[...].astype(jnp.float32))
    kv = (jnp.dot(hc, wkv_ref[...], preferred_element_type=jnp.float32)
          + bkv_ref[...].astype(jnp.float32))
    y = _gqa_attention(q, kv[:, :Kd], kv[:, Kd:], wo_ref, bo_ref, attn_sc,
                       heads=heads, kv_heads=kv_heads, head_dim=head_dim)
    x = xq + y                                                      # attn residual

    y2 = _ffn_f32(x, ln2_ref, w1_ref, b1_ref, w2_ref, b2_ref, eps, exact_gelu)
    o_ref[0] = (x + y2).astype(o_ref.dtype)                        # ffn residual


def _dec_cross_kernel(xq_ref, xc_ref, lnq_ref, lnc_ref,
                      wq_ref, bq_ref, wkv_ref, bkv_ref, wo_ref, bo_ref,
                      o_ref, attn_sc, *, heads, kv_heads, head_dim, eps):
    Kd = kv_heads * head_dim
    xq = xq_ref[0].astype(jnp.float32)
    xc = xc_ref[0].astype(jnp.float32)
    hq = _layernorm_f32(xq, lnq_ref, eps).astype(jnp.bfloat16)
    hc = _layernorm_f32(xc, lnc_ref, eps).astype(jnp.bfloat16)
    q = (jnp.dot(hq, wq_ref[...], preferred_element_type=jnp.float32)
         + bq_ref[...].astype(jnp.float32))
    kv = (jnp.dot(hc, wkv_ref[...], preferred_element_type=jnp.float32)
          + bkv_ref[...].astype(jnp.float32))
    y = _gqa_attention(q, kv[:, :Kd], kv[:, Kd:], wo_ref, bo_ref, attn_sc,
                       heads=heads, kv_heads=kv_heads, head_dim=head_dim)
    o_ref[0] = y.astype(o_ref.dtype)                               # no residual


def _block_compiler_params():
    return pltpu.CompilerParams(dimension_semantics=("parallel",),
                                vmem_limit_bytes=_VMEM_LIMIT)


def self_block(x, pa, pf, cfg):
    """Fused latent self-attention + FFN block (with residuals)."""
    B, T, D = x.shape
    heads, kvh, dh, eps = cfg["num_heads"], cfg["kv_heads"], cfg["head_dim"], cfg["ln_eps"]
    Hd, Kd = heads * dh, kvh * dh
    hidden = pf["w1"].shape[1]
    kernel = functools.partial(_self_block_kernel, heads=heads, kv_heads=kvh,
                               head_dim=dh, eps=eps,
                               exact_gelu=_exact_gelu_supported())
    full = lambda b: (0, 0)
    return pl.pallas_call(
        kernel,
        grid=(B,),
        in_specs=[
            pl.BlockSpec((1, T, D), lambda b: (b, 0, 0)),
            pl.BlockSpec((2, D), full),
            pl.BlockSpec((D, Hd + 2 * Kd), full),
            pl.BlockSpec((1, Hd + 2 * Kd), full),
            pl.BlockSpec((Hd, D), full),
            pl.BlockSpec((1, D), full),
            pl.BlockSpec((2, D), full),
            pl.BlockSpec((D, hidden), full),
            pl.BlockSpec((1, hidden), full),
            pl.BlockSpec((hidden, D), full),
            pl.BlockSpec((1, D), full),
        ],
        out_specs=pl.BlockSpec((1, T, D), lambda b: (b, 0, 0)),
        out_shape=jax.ShapeDtypeStruct((B, T, D), jnp.float32),
        scratch_shapes=[pltpu.VMEM((T, Hd), jnp.float32)],
        compiler_params=_block_compiler_params(),
    )(x, pa["ln"], pa["wqkv"], pa["bqkv"], pa["wo"], pa["bo"],
      pf["ln"], pf["w1"], pf["b1"], pf["w2"], pf["b2"])


def cross_block(x_q, x_ctx, pa, pf, cfg):
    """Fused cross-attention + FFN block (with residuals), e.g. encoder cross."""
    B, Tq, D = x_q.shape
    Tk = x_ctx.shape[1]
    heads, kvh, dh, eps = cfg["num_heads"], cfg["kv_heads"], cfg["head_dim"], cfg["ln_eps"]
    Hd, Kd = heads * dh, kvh * dh
    hidden = pf["w1"].shape[1]
    kernel = functools.partial(_cross_block_kernel, heads=heads, kv_heads=kvh,
                               head_dim=dh, eps=eps,
                               exact_gelu=_exact_gelu_supported())
    full = lambda b: (0, 0)
    return pl.pallas_call(
        kernel,
        grid=(B,),
        in_specs=[
            pl.BlockSpec((1, Tq, D), lambda b: (b, 0, 0)),
            pl.BlockSpec((1, Tk, D), lambda b: (b, 0, 0)),
            pl.BlockSpec((2, D), full),
            pl.BlockSpec((2, D), full),
            pl.BlockSpec((D, Hd), full),
            pl.BlockSpec((1, Hd), full),
            pl.BlockSpec((D, 2 * Kd), full),
            pl.BlockSpec((1, 2 * Kd), full),
            pl.BlockSpec((Hd, D), full),
            pl.BlockSpec((1, D), full),
            pl.BlockSpec((2, D), full),
            pl.BlockSpec((D, hidden), full),
            pl.BlockSpec((1, hidden), full),
            pl.BlockSpec((hidden, D), full),
            pl.BlockSpec((1, D), full),
        ],
        out_specs=pl.BlockSpec((1, Tq, D), lambda b: (b, 0, 0)),
        out_shape=jax.ShapeDtypeStruct((B, Tq, D), jnp.float32),
        scratch_shapes=[pltpu.VMEM((Tq, Hd), jnp.float32)],
        compiler_params=_block_compiler_params(),
    )(x_q, x_ctx, pa["ln_q"], pa["ln_ctx"], pa["wq"], pa["bq"], pa["wkv"], pa["bkv"],
      pa["wo"], pa["bo"], pf["ln"], pf["w1"], pf["b1"], pf["w2"], pf["b2"])


def dec_cross_block(x_q, x_ctx, pa, cfg):
    """Decoder cross-attention (no residual, no FFN)."""
    B, Tq, D = x_q.shape
    Tk = x_ctx.shape[1]
    heads, kvh, dh, eps = cfg["num_heads"], cfg["kv_heads"], cfg["head_dim"], cfg["ln_eps"]
    Hd, Kd = heads * dh, kvh * dh
    kernel = functools.partial(_dec_cross_kernel, heads=heads, kv_heads=kvh,
                               head_dim=dh, eps=eps)
    full = lambda b: (0, 0)
    return pl.pallas_call(
        kernel,
        grid=(B,),
        in_specs=[
            pl.BlockSpec((1, Tq, D), lambda b: (b, 0, 0)),
            pl.BlockSpec((1, Tk, D), lambda b: (b, 0, 0)),
            pl.BlockSpec((2, D), full),
            pl.BlockSpec((2, D), full),
            pl.BlockSpec((D, Hd), full),
            pl.BlockSpec((1, Hd), full),
            pl.BlockSpec((D, 2 * Kd), full),
            pl.BlockSpec((1, 2 * Kd), full),
            pl.BlockSpec((Hd, D), full),
            pl.BlockSpec((1, D), full),
        ],
        out_specs=pl.BlockSpec((1, Tq, D), lambda b: (b, 0, 0)),
        out_shape=jax.ShapeDtypeStruct((B, Tq, D), jnp.float32),
        scratch_shapes=[pltpu.VMEM((Tq, Hd), jnp.float32)],
        compiler_params=_block_compiler_params(),
    )(x_q, x_ctx, pa["ln_q"], pa["ln_ctx"], pa["wq"], pa["bq"], pa["wkv"], pa["bkv"],
      pa["wo"], pa["bo"])


# ----------------------------------------------------------------------------
# Token projections: one matmul per category (grid over the 11 categories).
# ----------------------------------------------------------------------------
def _token_proj_kernel(dec_ref, w_ref, b_ref, o_ref):
    x = dec_ref[0].astype(jnp.bfloat16)                            # (B*n_max, D)
    y = jnp.dot(x, w_ref[0], preferred_element_type=jnp.float32)
    o_ref[0] = (y + b_ref[0].astype(jnp.float32)).astype(o_ref.dtype)


def token_projections(decoded, w_stack, b_stack, layout):
    """decoded (B, Q, D) -> (n_cat, B*n_max, H*W); padded rows are discarded later."""
    B, Q, D = decoded.shape
    n_cat = w_stack.shape[0]
    HW = w_stack.shape[-1]
    n_max = layout["n_max"]
    rows = B * n_max

    tok = jnp.asarray(layout["tok_idx_pad"].reshape(-1), jnp.int32)      # (n_cat*n_max,)
    # Small D-sized gather/transpose in the wrapper (no HW-sized data is shuffled).
    dec_pad = decoded[:, tok, :].reshape(B, n_cat, n_max, D)
    dec_pad = dec_pad.transpose(1, 0, 2, 3).reshape(n_cat, rows, D)

    return pl.pallas_call(
        _token_proj_kernel,
        grid=(n_cat,),
        in_specs=[
            pl.BlockSpec((1, rows, D), lambda c: (c, 0, 0)),
            pl.BlockSpec((1, D, HW), lambda c: (c, 0, 0)),
            pl.BlockSpec((1, 1, HW), lambda c: (c, 0, 0)),
        ],
        out_specs=pl.BlockSpec((1, rows, HW), lambda c: (c, 0, 0)),
        out_shape=jax.ShapeDtypeStruct((n_cat, rows, HW), jnp.float32),
        compiler_params=pltpu.CompilerParams(
            dimension_semantics=("parallel",),
            vmem_limit_bytes=_VMEM_LIMIT),
    )(dec_pad, w_stack, b_stack)


# ----------------------------------------------------------------------------
# Parameter initialization (mirrors shapes / init of the PyTorch __init__).
# ----------------------------------------------------------------------------
def trunc_normal(key, shape, std=0.02):
    return jax.random.truncated_normal(key, -2.0, 2.0, shape, jnp.float32) * std


def _ln_params(D):
    return jnp.stack([jnp.ones((D,), jnp.float32), jnp.zeros((D,), jnp.float32)])


def init_cross_attn(key, D, heads, kvh, dh):
    Hd, Kd = heads * dh, kvh * dh
    ks = jax.random.split(key, 4)
    return {
        "ln_q": _ln_params(D),
        "ln_ctx": _ln_params(D),
        "wq": trunc_normal(ks[0], (D, Hd)).astype(jnp.bfloat16),
        "bq": jnp.zeros((1, Hd), jnp.float32),
        "wkv": jnp.concatenate([trunc_normal(ks[1], (D, Kd)),
                                trunc_normal(ks[2], (D, Kd))], axis=1).astype(jnp.bfloat16),
        "bkv": jnp.zeros((1, 2 * Kd), jnp.float32),
        "wo": trunc_normal(ks[3], (Hd, D)).astype(jnp.bfloat16),
        "bo": jnp.zeros((1, D), jnp.float32),
    }


def init_self_attn(key, D, heads, kvh, dh):
    Hd, Kd = heads * dh, kvh * dh
    ks = jax.random.split(key, 4)
    wq = trunc_normal(ks[0], (D, Hd))
    wk = trunc_normal(ks[1], (D, Kd))
    wv = trunc_normal(ks[2], (D, Kd))
    return {
        "ln": _ln_params(D),
        "wqkv": jnp.concatenate([wq, wk, wv], axis=1).astype(jnp.bfloat16),
        "bqkv": jnp.zeros((1, Hd + 2 * Kd), jnp.float32),
        "wo": trunc_normal(ks[3], (Hd, D)).astype(jnp.bfloat16),
        "bo": jnp.zeros((1, D), jnp.float32),
    }


def init_ffn(key, D, hidden):
    ks = jax.random.split(key, 2)
    return {
        "ln": _ln_params(D),
        "w1": trunc_normal(ks[0], (D, hidden)).astype(jnp.bfloat16),
        "b1": jnp.zeros((1, hidden), jnp.float32),
        "w2": trunc_normal(ks[1], (hidden, D)).astype(jnp.bfloat16),
        "b2": jnp.zeros((1, D), jnp.float32),
    }


def init_decoder_params(key, cfg):
    D = cfg["embed_dim"]
    HW = cfg["H"] * cfg["W"]
    hidden = int(D * cfg["mlp_ratio"])
    pe_dim = 2 * cfg["num_fourier_bands"] + 1        # _calculate_pos_encoding_dim
    heads, kvh, dh = cfg["num_heads"], cfg["kv_heads"], cfg["head_dim"]
    ks = iter(jax.random.split(key, 64))

    params = {
        "pos_embed": {"w": trunc_normal(next(ks), (pe_dim + 2, D)),
                      "b": jnp.zeros((D,), jnp.float32)},
        "lead_time_embed": {"w": trunc_normal(next(ks), (D, D)),
                            "b": jnp.zeros((D,), jnp.float32)},
        "absolute_time_embed": {"w": trunc_normal(next(ks), (D, D)),
                                "b": jnp.zeros((D,), jnp.float32)},
    }
    w_stack = [trunc_normal(next(ks), (D, HW)) for _ in CATEGORY_ORDER]
    params["token_proj_w"] = jnp.stack(w_stack).astype(jnp.bfloat16)   # (11, D, HW)
    params["token_proj_b"] = jnp.zeros((len(CATEGORY_ORDER), 1, HW), jnp.float32)

    # PerceiverIO (standard Perceiver-IO with GQA kv heads; the reference's
    # PerceiverIO source is external, this mirrors its constructor config).
    pio = {
        "latents": jax.random.normal(next(ks), (cfg["total_tokens"], D), jnp.float32),
        "enc_cross": init_cross_attn(next(ks), D, heads, kvh, dh),
        "enc_ff": init_ffn(next(ks), D, hidden),
        "layers": [{"attn": init_self_attn(next(ks), D, heads, kvh, dh),
                    "ff": init_ffn(next(ks), D, hidden)}
                   for _ in range(cfg["depth"])],
        "dec_cross": init_cross_attn(next(ks), D, heads, kvh, dh),
    }
    params["perceiver_io"] = pio
    return params


# ----------------------------------------------------------------------------
# Perceiver-IO forward built from the fused blocks.
# ----------------------------------------------------------------------------
def perceiver_io_forward(pio, x, queries, cfg):
    B = x.shape[0]
    latents = jnp.broadcast_to(pio["latents"][None], (B,) + pio["latents"].shape)
    latents = cross_block(latents, x, pio["enc_cross"], pio["enc_ff"], cfg)
    for layer in pio["layers"]:
        latents = self_block(latents, layer["attn"], layer["ff"], cfg)
    return dec_cross_block(queries, latents, pio["dec_cross"], cfg)


# ----------------------------------------------------------------------------
# Positional / time encodings (tiny glue — plain XLA).
# ----------------------------------------------------------------------------
def fourier_position_encoding_1d(n, num_bands, max_freq):
    """DeepMind/Perceiver fourier features over one index axis, concat_pos=True."""
    pos = jnp.linspace(-1.0, 1.0, n, dtype=jnp.float32)
    freqs = jnp.linspace(1.0, max_freq / 2.0, num_bands, dtype=jnp.float32)
    scaled = pos[:, None] * freqs[None, :] * jnp.pi
    return jnp.concatenate([pos[:, None], jnp.sin(scaled), jnp.cos(scaled)], axis=-1)


def time_encoding(times, embed_dim):
    half = embed_dim // 2
    emb = math.log(10000.0) / (half - 1)
    emb = jnp.exp(jnp.arange(half, dtype=jnp.float32) * -emb)
    emb = times[:, None] * emb[None, :]
    return jnp.concatenate([jnp.sin(emb), jnp.cos(emb)], axis=-1)


def build_token_layout(cfg):
    """Per category: start token index, count, and a padded (n_cat, n_max) token map."""
    counts = {
        "surface": len(cfg["surface_vars"]),
        "edaphic": len(cfg["edaphic_vars"]),
        "atmos": len(cfg["atmos_vars"]) * len(cfg["atmos_levels"]),
        "climate": len(cfg["climate_vars"]),
        "species": len(cfg["species_vars"]),
        "vegetation": len(cfg["vegetation_vars"]),
        "land": len(cfg["land_vars"]),
        "agriculture": len(cfg["agriculture_vars"]),
        "forest": len(cfg["forest_vars"]),
        "redlist": len(cfg["redlist_vars"]),
        "misc": len(cfg["misc_vars"]),
    }
    starts = {}
    cur = 0
    for name in CATEGORY_ORDER:
        starts[name] = cur
        # NOTE: reference does NOT advance current_idx after the forest block,
        # so forest/redlist/misc read decoded slices starting at the same index.
        if name not in ("forest", "redlist", "misc"):
            cur += counts[name]
    n_max = max(counts.values())
    Q = cfg["total_tokens"]
    tok_idx_pad = np.zeros((len(CATEGORY_ORDER), n_max), np.int32)
    for ci, name in enumerate(CATEGORY_ORDER):
        for t in range(n_max):
            tok_idx_pad[ci, t] = min(starts[name] + min(t, counts[name] - 1), Q - 1)
    return {"counts": counts, "starts": starts, "n_max": n_max,
            "tok_idx_pad": tok_idx_pad}


# ----------------------------------------------------------------------------
# BFMDecoder forward
# ----------------------------------------------------------------------------
def bfm_decoder_forward(params, cfg, x, lat, lon, lead_time, start_month):
    B, L, D = x.shape
    H, W = cfg["H"], cfg["W"]
    HW = H * W
    Q = cfg["total_tokens"]

    # ---- position encoding of the (lat, lon) grid (fourier along W; H acts as
    #      the batch axis of the position encoder — reference quirk).
    lat_grid, lon_grid = jnp.meshgrid(lat, lon, indexing="ij")
    pos_input = jnp.stack([lat_grid, lon_grid], axis=-1)                 # (H, W, 2)
    pe_w = fourier_position_encoding_1d(W, cfg["num_fourier_bands"], cfg["max_frequency"])
    pe = jnp.broadcast_to(pe_w[None], (H, W, pe_w.shape[-1]))
    pos_encode = jnp.concatenate([pos_input, pe], axis=-1).reshape(HW, -1)
    pos_proj = pos_encode @ params["pos_embed"]["w"] + params["pos_embed"]["b"]  # (HW, D)

    # ---- F.interpolate(size=Q, mode='linear', align_corners=False):
    #      exactly 2 taps per output row -> gather + lerp (no dense matmul).
    idx = jnp.arange(Q, dtype=jnp.float32)
    src = jnp.clip((idx + 0.5) * (HW / Q) - 0.5, 0.0, HW - 1.0)
    i0 = jnp.floor(src).astype(jnp.int32)
    i1 = jnp.minimum(i0 + 1, HW - 1)
    w1 = (src - i0.astype(jnp.float32))[:, None]
    pos_q = pos_proj[i0] * (1.0 - w1) + pos_proj[i1] * w1                # (Q, D)

    # ---- lead-time + absolute-time embeddings in one (tiny) matmul
    lead_times = lead_time * jnp.ones((B,), jnp.float32)
    abs_times = jnp.full((B,), float(start_month), jnp.float32)
    t_in = jnp.concatenate([time_encoding(lead_times, D),
                            time_encoding(abs_times, D)], axis=-1)       # (B, 2D)
    w_t = jnp.concatenate([params["lead_time_embed"]["w"],
                           params["absolute_time_embed"]["w"]], axis=0)  # (2D, D)
    b_t = params["lead_time_embed"]["b"] + params["absolute_time_embed"]["b"]
    t_emb = t_in @ w_t + b_t                                             # (B, D)

    # queries = zeros + pos + lead_time + absolute_time
    queries = pos_q[None, :, :] + t_emb[:, None, :]                      # (B, Q, D)

    # ---- PerceiverIO (fused per-block kernels)
    decoded = perceiver_io_forward(params["perceiver_io"], x, queries, cfg)  # (B, Q, D)

    # ---- all 11 category token projections, one matmul per category
    layout = build_token_layout(cfg)
    proj = token_projections(decoded, params["token_proj_w"],
                             params["token_proj_b"], layout)             # (11, B*n_max, HW)
    n_max = layout["n_max"]

    def grab(name, var_names, levels=None):
        ci = CATEGORY_ORDER.index(name)
        n = layout["counts"][name]
        block = proj[ci].reshape(B, n_max, H, W)[:, :n]                  # (B, n, H, W)
        if levels is not None:
            block = block.reshape(B, len(var_names), levels, H, W)
        return {v: block[:, i] for i, v in enumerate(var_names)}

    output = {
        "surface_variables": grab("surface", cfg["surface_vars"]),
        "edaphic_variables": grab("edaphic", cfg["edaphic_vars"]),
        "atmospheric_variables": grab("atmos", cfg["atmos_vars"],
                                      levels=len(cfg["atmos_levels"])),
        "climate_variables": grab("climate", cfg["climate_vars"]),
        "species_variables": grab("species", cfg["species_vars"]),
        "vegetation_variables": grab("vegetation", cfg["vegetation_vars"]),
        "land_variables": grab("land", cfg["land_vars"]),
        "agriculture_variables": grab("agriculture", cfg["agriculture_vars"]),
        "forest_variables": grab("forest", cfg["forest_vars"]),
        "redlist_variables": grab("redlist", cfg["redlist_vars"]),
        "misc_variables": grab("misc", cfg["misc_vars"]),
    }
    return output


# ----------------------------------------------------------------------------
# Main
# ----------------------------------------------------------------------------
if __name__ == "__main__":
    cfg = dict(
        surface_vars=("t2m", "msl"),
        edaphic_vars=("swvl1",),
        atmos_vars=("z", "t"),
        atmos_levels=[500, 700],
        climate_vars=("tcc",),
        species_vars=("sp0",),
        vegetation_vars=("ndvi",),
        land_vars=("lsm",),
        agriculture_vars=("crop",),
        forest_vars=("fcover",),
        redlist_vars=("rli",),
        misc_vars=("misc0",),
        embed_dim=32,
        num_heads=4,
        kv_heads=2,
        head_dim=8,
        depth=2,
        mlp_ratio=4.0,
        ln_eps=1e-5,
        num_fourier_bands=4,
        max_frequency=224.0,
        H=8,
        W=16,
    )
    cfg["total_tokens"] = (
        len(cfg["surface_vars"]) + len(cfg["edaphic_vars"])
        + len(cfg["atmos_vars"]) * len(cfg["atmos_levels"])
        + len(cfg["climate_vars"]) + len(cfg["species_vars"])
        + len(cfg["vegetation_vars"]) + len(cfg["land_vars"])
        + len(cfg["agriculture_vars"]) + len(cfg["forest_vars"])
        + len(cfg["redlist_vars"]) + len(cfg["misc_vars"])
    )

    # TODO(synk): dropout layers (pos_drop / PerceiverIO dropouts) are eval-mode
    # identities; the reference PerceiverIO source is external, so a standard
    # Perceiver-IO (prenorm cross-attn + latent self-attn + GELU MLP, GQA kv heads)
    # matching the constructor config is used. The absolute-time month is passed as
    # a scalar instead of parsing a timestamp string.

    key = jax.random.PRNGKey(0)
    k_params, k_x = jax.random.split(key)
    params = init_decoder_params(k_params, cfg)

    B, L, D = 2, 8, cfg["embed_dim"]
    x = jax.random.normal(k_x, (B, L, D), jnp.float32)
    lat = jnp.linspace(30.0, 60.0, cfg["H"], dtype=jnp.float32)
    lon = jnp.linspace(-10.0, 40.0, cfg["W"], dtype=jnp.float32)
    lead_time = 6.0
    start_month = 3

    out = bfm_decoder_forward(params, cfg, x, lat, lon, lead_time, start_month)
    out = jax.block_until_ready(out)

    assert out["surface_variables"]["t2m"].shape == (B, cfg["H"], cfg["W"])
    assert out["atmospheric_variables"]["z"].shape == (B, len(cfg["atmos_levels"]), cfg["H"], cfg["W"])
    assert out["misc_variables"]["misc0"].shape == (B, cfg["H"], cfg["W"])
    print("KERNEL_OK")
</pallas_src>

<mosaic_0001>
module attributes {stable_mosaic.version = 11 : i64} {
  func.func @k(%arg0: memref<8x128xf32, #tpu.memory_space<vmem>>, %arg1: memref<8x128xf32, #tpu.memory_space<vmem>>) attributes {dimension_semantics = [], scalar_prefetch = 0 : i64, scratch_operands = 0 : i64, tpu.core_type = #tpu.core_type<tc>} {
    %c0 = arith.constant 0 : index
    %c0_0 = arith.constant 0 : index
    %0 = vector.load %arg0[%c0, %c0_0] : memref<8x128xf32, #tpu.memory_space<vmem>>, vector<8x128xf32>
    %1 = math.erf %0 : vector<8x128xf32>
    %c0_1 = arith.constant 0 : index
    %c0_2 = arith.constant 0 : index
    %2 = vector.load %arg1[%c0_1, %c0_2] : memref<8x128xf32, #tpu.memory_space<vmem>>, vector<8x128xf32>
    tpu.vector_store %arg1[%c0_1, %c0_2], %1 {strides = array<i32>} : memref<8x128xf32, #tpu.memory_space<vmem>>, vector<8x128xf32>,
    return
  }
}

module attributes {stable_mosaic.version = 11 : i64} {
  func.func @_cross_block_kernel(%arg0: i32, %arg1: memref<1x15x32xf32, #tpu.memory_space<vmem>>, %arg2: memref<1x8x32xf32, #tpu.memory_space<vmem>>, %arg3: memref<2x32xf32, #tpu.memory_space<vmem>>, %arg4: memref<2x32xf32, #tpu.memory_space<vmem>>, %arg5: memref<32x32xbf16, #tpu.memory_space<vmem>>, %arg6: memref<1x32xf32, #tpu.memory_space<vmem>>, %arg7: memref<32x32xbf16, #tpu.memory_space<vmem>>, %arg8: memref<1x32xf32, #tpu.memory_space<vmem>>, %arg9: memref<32x32xbf16, #tpu.memory_space<vmem>>, %arg10: memref<1x32xf32, #tpu.memory_space<vmem>>, %arg11: memref<2x32xf32, #tpu.memory_space<vmem>>, %arg12: memref<32x128xbf16, #tpu.memory_space<vmem>>, %arg13: memref<1x128xf32, #tpu.memory_space<vmem>>, %arg14: memref<128x32xbf16, #tpu.memory_space<vmem>>, %arg15: memref<1x32xf32, #tpu.memory_space<vmem>>, %arg16: memref<1x15x32xf32, #tpu.memory_space<vmem>>, %arg17: memref<15x32xf32, #tpu.memory_space<vmem>>) attributes {dimension_semantics = [#tpu.dimension_semantics<parallel>], iteration_bounds = array<i64: 2>, scalar_prefetch = 0 : i64, scratch_operands = 1 : i64, tpu.core_type = #tpu.core_type<tc>, window_params = [{transform_indices = @transform_0, window_bounds = array<i64: 1, 15, 32>}, {transform_indices = @transform_1, window_bounds = array<i64: 1, 8, 32>}, {pipeline_mode = #tpu.pipeline_mode<synchronous>, transform_indices = @transform_2, window_bounds = array<i64: 2, 32>}, {pipeline_mode = #tpu.pipeline_mode<synchronous>, transform_indices = @transform_3, window_bounds = array<i64: 2, 32>}, {pipeline_mode = #tpu.pipeline_mode<synchronous>, transform_indices = @transform_4, window_bounds = array<i64: 32, 32>}, {pipeline_mode = #tpu.pipeline_mode<synchronous>, transform_indices = @transform_5, window_bounds = array<i64: 1, 32>}, {pipeline_mode = #tpu.pipeline_mode<synchronous>, transform_indices = @transform_6, window_bounds = array<i64: 32, 32>}, {pipeline_mode = #tpu.pipeline_mode<synchronous>, transform_indices = @transform_7, window_bounds = array<i64: 1, 32>}, {pipeline_mode = #tpu.pipeline_mode<synchronous>, transform_indices = @transform_8, window_bounds = array<i64: 32, 32>}, {pipeline_mode = #tpu.pipeline_mode<synchronous>, transform_indices = @transform_9, window_bounds = array<i64: 1, 32>}, {pipeline_mode = #tpu.pipeline_mode<synchronous>, transform_indices = @transform_10, window_bounds = array<i64: 2, 32>}, {pipeline_mode = #tpu.pipeline_mode<synchronous>, transform_indices = @transform_11, window_bounds = array<i64: 32, 128>}, {pipeline_mode = #tpu.pipeline_mode<synchronous>, transform_indices = @transform_12, window_bounds = array<i64: 1, 128>}, {pipeline_mode = #tpu.pipeline_mode<synchronous>, transform_indices = @transform_13, window_bounds = array<i64: 128, 32>}, {pipeline_mode = #tpu.pipeline_mode<synchronous>, transform_indices = @transform_14, window_bounds = array<i64: 1, 32>}, {transform_indices = @transform_15, window_bounds = array<i64: 1, 15, 32>}]} {
    %c0 = arith.constant 0 : index
    %c0_0 = arith.constant 0 : index
    %c0_1 = arith.constant 0 : index
    %0 = vector.load %arg1[%c0, %c0_0, %c0_1] : memref<1x15x32xf32, #tpu.memory_space<vmem>>, vector<1x15x32xf32>
    %1 = vector.shape_cast %0 : vector<1x15x32xf32> to vector<15x32xf32>
    %c0_2 = arith.constant 0 : index
    %c0_3 = arith.constant 0 : index
    %c0_4 = arith.constant 0 : index
    %2 = vector.load %arg2[%c0_2, %c0_3, %c0_4] : memref<1x8x32xf32, #tpu.memory_space<vmem>>, vector<1x8x32xf32>
    %3 = vector.shape_cast %2 : vector<1x8x32xf32> to vector<8x32xf32>
    %c0_5 = arith.constant 0 : index
    %c0_6 = arith.constant 0 : index
    %4 = vector.load %arg3[%c0_5, %c0_6] : memref<2x32xf32, #tpu.memory_space<vmem>>, vector<1x32xf32>
    %5 = vector.shape_cast %4 : vector<1x32xf32> to vector<32xf32>
    %c1 = arith.constant 1 : index
    %c0_7 = arith.constant 0 : index
    %6 = vector.load %arg3[%c1, %c0_7] : memref<2x32xf32, #tpu.memory_space<vmem>>, vector<1x32xf32>
    %7 = vector.shape_cast %6 : vector<1x32xf32> to vector<32xf32>
    %cst = arith.constant dense<0.000000e+00> : vector<15xf32>
    %8 = vector.multi_reduction <add>, %1, %cst [1] : vector<15x32xf32> to vector<15xf32>
    %9 = vector.shape_cast %8 : vector<15xf32> to vector<15x1xf32>
    %cst_8 = arith.constant 3.200000e+01 : f32
    %10 = vector.broadcast %cst_8 : f32 to vector<15x1xf32>
    %11 = arith.divf %9, %10 : vector<15x1xf32>
    %12 = vector.broadcast %11 : vector<15x1xf32> to vector<15x32xf32>
    %13 = arith.subf %1, %12 : vector<15x32xf32>
    %14 = arith.mulf %13, %13 : vector<15x32xf32>
    %cst_9 = arith.constant dense<0.000000e+00> : vector<15xf32>
    %15 = vector.multi_reduction <add>, %14, %cst_9 [1] : vector<15x32xf32> to vector<15xf32>
    %16 = vector.shape_cast %15 : vector<15xf32> to vector<15x1xf32>
    %cst_10 = arith.constant 3.200000e+01 : f32
    %17 = vector.broadcast %cst_10 : f32 to vector<15x1xf32>
    %18 = arith.divf %16, %17 : vector<15x1xf32>
    %19 = vector.broadcast %11 : vector<15x1xf32> to vector<15x32xf32>
    %20 = arith.subf %1, %19 : vector<15x32xf32>
    %cst_11 = arith.constant 9.99999974E-6 : f32
    %21 = vector.broadcast %cst_11 : f32 to vector<15x1xf32>
    %22 = arith.addf %18, %21 : vector<15x1xf32>
    %23 = math.rsqrt %22 : vector<15x1xf32>
    %24 = vector.broadcast %23 : vector<15x1xf32> to vector<15x32xf32>
    %25 = arith.mulf %20, %24 : vector<15x32xf32>
    %26 = vector.shape_cast %5 : vector<32xf32> to vector<1x32xf32>
    %27 = vector.broadcast %26 : vector<1x32xf32> to vector<15x32xf32>
    %28 = arith.mulf %25, %27 : vector<15x32xf32>
    %29 = vector.shape_cast %7 : vector<32xf32> to vector<1x32xf32>
    %30 = vector.broadcast %29 : vector<1x32xf32> to vector<15x32xf32>
    %31 = arith.addf %28, %30 : vector<15x32xf32>
    %32 = arith.truncf %31 : vector<15x32xf32> to vector<15x32xbf16>
    %c0_12 = arith.constant 0 : index
    %c0_13 = arith.constant 0 : index
    %33 = vector.load %arg4[%c0_12, %c0_13] : memref<2x32xf32, #tpu.memory_space<vmem>>, vector<1x32xf32>
    %34 = vector.shape_cast %33 : vector<1x32xf32> to vector<32xf32>
    %c1_14 = arith.constant 1 : index
    %c0_15 = arith.constant 0 : index
    %35 = vector.load %arg4[%c1_14, %c0_15] : memref<2x32xf32, #tpu.memory_space<vmem>>, vector<1x32xf32>
    %36 = vector.shape_cast %35 : vector<1x32xf32> to vector<32xf32>
    %cst_16 = arith.constant dense<0.000000e+00> : vector<8xf32>
    %37 = vector.multi_reduction <add>, %3, %cst_16 [1] : vector<8x32xf32> to vector<8xf32>
    %38 = vector.shape_cast %37 : vector<8xf32> to vector<8x1xf32>
    %cst_17 = arith.constant 3.200000e+01 : f32
    %39 = vector.broadcast %cst_17 : f32 to vector<8x1xf32>
    %40 = arith.divf %38, %39 : vector<8x1xf32>
    %41 = vector.broadcast %40 : vector<8x1xf32> to vector<8x32xf32>
    %42 = arith.subf %3, %41 : vector<8x32xf32>
    %43 = arith.mulf %42, %42 : vector<8x32xf32>
    %cst_18 = arith.constant dense<0.000000e+00> : vector<8xf32>
    %44 = vector.multi_reduction <add>, %43, %cst_18 [1] : vector<8x32xf32> to vector<8xf32>
    %45 = vector.shape_cast %44 : vector<8xf32> to vector<8x1xf32>
    %cst_19 = arith.constant 3.200000e+01 : f32
    %46 = vector.broadcast %cst_19 : f32 to vector<8x1xf32>
    %47 = arith.divf %45, %46 : vector<8x1xf32>
    %48 = vector.broadcast %40 : vector<8x1xf32> to vector<8x32xf32>
    %49 = arith.subf %3, %48 : vector<8x32xf32>
    %cst_20 = arith.constant 9.99999974E-6 : f32
    %50 = vector.broadcast %cst_20 : f32 to vector<8x1xf32>
    %51 = arith.addf %47, %50 : vector<8x1xf32>
    %52 = math.rsqrt %51 : vector<8x1xf32>
    %53 = vector.broadcast %52 : vector<8x1xf32> to vector<8x32xf32>
    %54 = arith.mulf %49, %53 : vector<8x32xf32>
    %55 = vector.shape_cast %34 : vector<32xf32> to vector<1x32xf32>
    %56 = vector.broadcast %55 : vector<1x32xf32> to vector<8x32xf32>
    %57 = arith.mulf %54, %56 : vector<8x32xf32>
    %58 = vector.shape_cast %36 : vector<32xf32> to vector<1x32xf32>
    %59 = vector.broadcast %58 : vector<1x32xf32> to vector<8x32xf32>
    %60 = arith.addf %57, %59 : vector<8x32xf32>
    %61 = arith.truncf %60 : vector<8x32xf32> to vector<8x32xbf16>
    %c0_21 = arith.constant 0 : index
    %c0_22 = arith.constant 0 : index
    %62 = vector.load %arg5[%c0_21, %c0_22] : memref<32x32xbf16, #tpu.memory_space<vmem>>, vector<32x32xbf16>
    %cst_23 = arith.constant dense<0.000000e+00> : vector<15x32xf32>
    %63 = tpu.matmul %32, %62, %cst_23 {dimension_numbers = #tpu.dot_dimension_numbers<[1], [0], [0], [1], [0, 0, 1, 1], [], []>} : vector<15x32xbf16>, vector<32x32xbf16>, vector<15x32xf32> -> vector<15x32xf32>
    %c0_24 = arith.constant 0 : index
    %c0_25 = arith.constant 0 : index
    %64 = vector.load %arg6[%c0_24, %c0_25] : memref<1x32xf32, #tpu.memory_space<vmem>>, vector<1x32xf32>
    %65 = vector.broadcast %64 : vector<1x32xf32> to vector<15x32xf32>
    %66 = arith.addf %63, %65 : vector<15x32xf32>
    %c0_26 = arith.constant 0 : index
    %c0_27 = arith.constant 0 : index
    %67 = vector.load %arg7[%c0_26, %c0_27] : memref<32x32xbf16, #tpu.memory_space<vmem>>, vector<32x32xbf16>
    %cst_28 = arith.constant dense<0.000000e+00> : vector<8x32xf32>
    %68 = tpu.matmul %61, %67, %cst_28 {dimension_numbers = #tpu.dot_dimension_numbers<[1], [0], [0], [1], [0, 0, 1, 1], [], []>} : vector<8x32xbf16>, vector<32x32xbf16>, vector<8x32xf32> -> vector<8x32xf32>
    %c0_29 = arith.constant 0 : index
    %c0_30 = arith.constant 0 : index
    %69 = vector.load %arg8[%c0_29, %c0_30] : memref<1x32xf32, #tpu.memory_space<vmem>>, vector<1x32xf32>
    %70 = vector.broadcast %69 : vector<1x32xf32> to vector<8x32xf32>
    %71 = arith.addf %68, %70 : vector<8x32xf32>
    %72 = vector.extract_strided_slice %71 {offsets = [0, 0], sizes = [8, 16], strides = [1, 1]} : vector<8x32xf32> to vector<8x16xf32>
    %73 = vector.extract_strided_slice %71 {offsets = [0, 16], sizes = [8, 16], strides = [1, 1]} : vector<8x32xf32> to vector<8x16xf32>
    %74 = arith.truncf %66 : vector<15x32xf32> to vector<15x32xbf16>
    %75 = arith.truncf %72 : vector<8x16xf32> to vector<8x16xbf16>
    %76 = arith.truncf %73 : vector<8x16xf32> to vector<8x16xbf16>
    %77 = vector.extract_strided_slice %74 {offsets = [0, 0], sizes = [15, 16], strides = [1, 1]} : vector<15x32xbf16> to vector<15x16xbf16>
    %78 = vector.shape_cast %77 : vector<15x16xbf16> to vector<15x2x8xbf16>
    %79 = tpu.transpose %78, [1, 0, 2] : vector<15x2x8xbf16> -> vector<2x15x8xbf16>
    %80 = vector.shape_cast %79 : vector<2x15x8xbf16> to vector<30x8xbf16>
    %81 = vector.extract_strided_slice %75 {offsets = [0, 0], sizes = [8, 8], strides = [1, 1]} : vector<8x16xbf16> to vector<8x8xbf16>
    %82 = vector.extract_strided_slice %76 {offsets = [0, 0], sizes = [8, 8], strides = [1, 1]} : vector<8x16xbf16> to vector<8x8xbf16>
    %cst_31 = arith.constant dense<0.000000e+00> : vector<30x8xf32>
    %83 = tpu.matmul %80, %81, %cst_31 {dimension_numbers = #tpu.dot_dimension_numbers<[1], [1], [0], [0], [0, 0, 1, 0], [], []>} : vector<30x8xbf16>, vector<8x8xbf16>, vector<30x8xf32> -> vector<30x8xf32>
    %cst_32 = arith.constant 0.353553385 : f32
    %84 = vector.broadcast %cst_32 : f32 to vector<30x8xf32>
    %85 = arith.mulf %83, %84 : vector<30x8xf32>
    %cst_33 = arith.constant dense<0xFF800000> : vector<30xf32>
    %86 = vector.multi_reduction <maximumf>, %85, %cst_33 [1] : vector<30x8xf32> to vector<30xf32>
    %87 = vector.shape_cast %86 : vector<30xf32> to vector<30x1xf32>
    %88 = vector.broadcast %87 : vector<30x1xf32> to vector<30x8xf32>
    %89 = arith.subf %85, %88 : vector<30x8xf32>
    %90 = math.exp %89 : vector<30x8xf32>
    %cst_34 = arith.constant dense<0.000000e+00> : vector<30xf32>
    %91 = vector.multi_reduction <add>, %90, %cst_34 [1] : vector<30x8xf32> to vector<30xf32>
    %92 = vector.shape_cast %91 : vector<30xf32> to vector<30x1xf32>
    %93 = vector.broadcast %92 : vector<30x1xf32> to vector<30x8xf32>
    %94 = arith.divf %90, %93 : vector<30x8xf32>
    %95 = arith.truncf %94 : vector<30x8xf32> to vector<30x8xbf16>
    %cst_35 = arith.constant dense<0.000000e+00> : vector<30x8xf32>
    %96 = tpu.matmul %95, %82, %cst_35 {dimension_numbers = #tpu.dot_dimension_numbers<[1], [0], [0], [1], [0, 0, 1, 1], [], []>} : vector<30x8xbf16>, vector<8x8xbf16>, vector<30x8xf32> -> vector<30x8xf32>
    %97 = vector.shape_cast %96 : vector<30x8xf32> to vector<2x15x8xf32>
    %98 = tpu.transpose %97, [1, 0, 2] : vector<2x15x8xf32> -> vector<15x2x8xf32>
    %99 = vector.shape_cast %98 : vector<15x2x8xf32> to vector<15x16xf32>
    %c0_36 = arith.constant 0 : index
    %c0_37 = arith.constant 0 : index
    %100 = vector.load %arg17[%c0_36, %c0_37] : memref<15x32xf32, #tpu.memory_space<vmem>>, vector<15x16xf32>
    tpu.vector_store %arg17[%c0_36, %c0_37], %99 {strides = array<i32>} : memref<15x32xf32, #tpu.memory_space<vmem>>, vector<15x16xf32>,
    %101 = vector.extract_strided_slice %74 {offsets = [0, 16], sizes = [15, 16], strides = [1, 1]} : vector<15x32xbf16> to vector<15x16xbf16>
    %102 = vector.shape_cast %101 : vector<15x16xbf16> to vector<15x2x8xbf16>
    %103 = tpu.transpose %102, [1, 0, 2] : vector<15x2x8xbf16> -> vector<2x15x8xbf16>
    %104 = vector.shape_cast %103 : vector<2x15x8xbf16> to vector<30x8xbf16>
    %105 = vector.extract_strided_slice %75 {offsets = [0, 8], sizes = [8, 8], strides = [1, 1]} : vector<8x16xbf16> to vector<8x8xbf16>
    %106 = vector.extract_strided_slice %76 {offsets = [0, 8], sizes = [8, 8], strides = [1, 1]} : vector<8x16xbf16> to vector<8x8xbf16>
    %cst_38 = arith.constant dense<0.000000e+00> : vector<30x8xf32>
    %107 = tpu.matmul %104, %105, %cst_38 {dimension_numbers = #tpu.dot_dimension_numbers<[1], [1], [0], [0], [0, 0, 1, 0], [], []>} : vector<30x8xbf16>, vector<8x8xbf16>, vector<30x8xf32> -> vector<30x8xf32>
    %cst_39 = arith.constant 0.353553385 : f32
    %108 = vector.broadcast %cst_39 : f32 to vector<30x8xf32>
    %109 = arith.mulf %107, %108 : vector<30x8xf32>
    %cst_40 = arith.constant dense<0xFF800000> : vector<30xf32>
    %110 = vector.multi_reduction <maximumf>, %109, %cst_40 [1] : vector<30x8xf32> to vector<30xf32>
    %111 = vector.shape_cast %110 : vector<30xf32> to vector<30x1xf32>
    %112 = vector.broadcast %111 : vector<30x1xf32> to vector<30x8xf32>
    %113 = arith.subf %109, %112 : vector<30x8xf32>
    %114 = math.exp %113 : vector<30x8xf32>
    %cst_41 = arith.constant dense<0.000000e+00> : vector<30xf32>
    %115 = vector.multi_reduction <add>, %114, %cst_41 [1] : vector<30x8xf32> to vector<30xf32>
    %116 = vector.shape_cast %115 : vector<30xf32> to vector<30x1xf32>
    %117 = vector.broadcast %116 : vector<30x1xf32> to vector<30x8xf32>
    %118 = arith.divf %114, %117 : vector<30x8xf32>
    %119 = arith.truncf %118 : vector<30x8xf32> to vector<30x8xbf16>
    %cst_42 = arith.constant dense<0.000000e+00> : vector<30x8xf32>
    %120 = tpu.matmul %119, %106, %cst_42 {dimension_numbers = #tpu.dot_dimension_numbers<[1], [0], [0], [1], [0, 0, 1, 1], [], []>} : vector<30x8xbf16>, vector<8x8xbf16>, vector<30x8xf32> -> vector<30x8xf32>
    %121 = vector.shape_cast %120 : vector<30x8xf32> to vector<2x15x8xf32>
    %122 = tpu.transpose %121, [1, 0, 2] : vector<2x15x8xf32> -> vector<15x2x8xf32>
    %123 = vector.shape_cast %122 : vector<15x2x8xf32> to vector<15x16xf32>
    %c0_43 = arith.constant 0 : index
    %c16 = arith.constant 16 : index
    %124 = vector.load %arg17[%c0_43, %c16] : memref<15x32xf32, #tpu.memory_space<vmem>>, vector<15x16xf32>
    tpu.vector_store %arg17[%c0_43, %c16], %123 {strides = array<i32>} : memref<15x32xf32, #tpu.memory_space<vmem>>, vector<15x16xf32>,
    %c0_44 = arith.constant 0 : index
    %c0_45 = arith.constant 0 : index
    %125 = vector.load %arg17[%c0_44, %c0_45] : memref<15x32xf32, #tpu.memory_space<vmem>>, vector<15x32xf32>
    %126 = arith.truncf %125 : vector<15x32xf32> to vector<15x32xbf16>
    %c0_46 = arith.constant 0 : index
    %c0_47 = arith.constant 0 : index
    %127 = vector.load %arg9[%c0_46, %c0_47] : memref<32x32xbf16, #tpu.memory_space<vmem>>, vector<32x32xbf16>
    %cst_48 = arith.constant dense<0.000000e+00> : vector<15x32xf32>
    %128 = tpu.matmul %126, %127, %cst_48 {dimension_numbers = #tpu.dot_dimension_numbers<[1], [0], [0], [1], [0, 0, 1, 1], [], []>} : vector<15x32xbf16>, vector<32x32xbf16>, vector<15x32xf32> -> vector<15x32xf32>
    %c0_49 = arith.constant 0 : index
    %c0_50 = arith.constant 0 : index
    %129 = vector.load %arg10[%c0_49, %c0_50] : memref<1x32xf32, #tpu.memory_space<vmem>>, vector<1x32xf32>
    %130 = vector.broadcast %129 : vector<1x32xf32> to vector<15x32xf32>
    %131 = arith.addf %128, %130 : vector<15x32xf32>
    %132 = arith.addf %1, %131 : vector<15x32xf32>
    %c0_51 = arith.constant 0 : index
    %c0_52 = arith.constant 0 : index
    %133 = vector.load %arg11[%c0_51, %c0_52] : memref<2x32xf32, #tpu.memory_space<vmem>>, vector<1x32xf32>
    %134 = vector.shape_cast %133 : vector<1x32xf32> to vector<32xf32>
    %c1_53 = arith.constant 1 : index
    %c0_54 = arith.constant 0 : index
    %135 = vector.load %arg11[%c1_53, %c0_54] : memref<2x32xf32, #tpu.memory_space<vmem>>, vector<1x32xf32>
    %136 = vector.shape_cast %135 : vector<1x32xf32> to vector<32xf32>
    %cst_55 = arith.constant dense<0.000000e+00> : vector<15xf32>
    %137 = vector.multi_reduction <add>, %132, %cst_55 [1] : vector<15x32xf32> to vector<15xf32>
    %138 = vector.shape_cast %137 : vector<15xf32> to vector<15x1xf32>
    %cst_56 = arith.constant 3.200000e+01 : f32
    %139 = vector.broadcast %cst_56 : f32 to vector<15x1xf32>
    %140 = arith.divf %138, %139 : vector<15x1xf32>
    %141 = vector.broadcast %140 : vector<15x1xf32> to vector<15x32xf32>
    %142 = arith.subf %132, %141 : vector<15x32xf32>
    %143 = arith.mulf %142, %142 : vector<15x32xf32>
    %cst_57 = arith.constant dense<0.000000e+00> : vector<15xf32>
    %144 = vector.multi_reduction <add>, %143, %cst_57 [1] : vector<15x32xf32> to vector<15xf32>
    %145 = vector.shape_cast %144 : vector<15xf32> to vector<15x1xf32>
    %cst_58 = arith.constant 3.200000e+01 : f32
    %146 = vector.broadcast %cst_58 : f32 to vector<15x1xf32>
    %147 = arith.divf %145, %146 : vector<15x1xf32>
    %148 = vector.broadcast %140 : vector<15x1xf32> to vector<15x32xf32>
    %149 = arith.subf %132, %148 : vector<15x32xf32>
    %cst_59 = arith.constant 9.99999974E-6 : f32
    %150 = vector.broadcast %cst_59 : f32 to vector<15x1xf32>
    %151 = arith.addf %147, %150 : vector<15x1xf32>
    %152 = math.rsqrt %151 : vector<15x1xf32>
    %153 = vector.broadcast %152 : vector<15x1xf32> to vector<15x32xf32>
    %154 = arith.mulf %149, %153 : vector<15x32xf32>
    %155 = vector.shape_cast %134 : vector<32xf32> to vector<1x32xf32>
    %156 = vector.broadcast %155 : vector<1x32xf32> to vector<15x32xf32>
    %157 = arith.mulf %154, %156 : vector<15x32xf32>
    %158 = vector.shape_cast %136 : vector<32xf32> to vector<1x32xf32>
    %159 = vector.broadcast %158 : vector<1x32xf32> to vector<15x32xf32>
    %160 = arith.addf %157, %159 : vector<15x32xf32>
    %161 = arith.truncf %160 : vector<15x32xf32> to vector<15x32xbf16>
    %c0_60 = arith.constant 0 : index
    %c0_61 = arith.constant 0 : index
    %162 = vector.load %arg12[%c0_60, %c0_61] : memref<32x128xbf16, #tpu.memory_space<vmem>>, vector<32x128xbf16>
    %cst_62 = arith.constant dense<0.000000e+00> : vector<15x128xf32>
    %163 = tpu.matmul %161, %162, %cst_62 {dimension_numbers = #tpu.dot_dimension_numbers<[1], [0], [0], [1], [0, 0, 1, 1], [], []>} : vector<15x32xbf16>, vector<32x128xbf16>, vector<15x128xf32> -> vector<15x128xf32>
    %c0_63 = arith.constant 0 : index
    %c0_64 = arith.constant 0 : index
    %164 = vector.load %arg13[%c0_63, %c0_64] : memref<1x128xf32, #tpu.memory_space<vmem>>, vector<1x128xf32>
    %165 = vector.broadcast %164 : vector<1x128xf32> to vector<15x128xf32>
    %166 = arith.addf %163, %165 : vector<15x128xf32>
    %167 = arith.mulf %166, %166 : vector<15x128xf32>
    %168 = arith.mulf %166, %167 : vector<15x128xf32>
    %cst_65 = arith.constant 4.471500e-02 : f32
    %169 = vector.broadcast %cst_65 : f32 to vector<15x128xf32>
    %170 = arith.mulf %169, %168 : vector<15x128xf32>
    %171 = arith.addf %166, %170 : vector<15x128xf32>
    %cst_66 = arith.constant 0.797884583 : f32
    %172 = vector.broadcast %cst_66 : f32 to vector<15x128xf32>
    %173 = arith.mulf %172, %171 : vector<15x128xf32>
    %174 = math.tanh %173 : vector<15x128xf32>
    %cst_67 = arith.constant 1.000000e+00 : f32
    %175 = vector.broadcast %cst_67 : f32 to vector<15x128xf32>
    %176 = arith.addf %175, %174 : vector<15x128xf32>
    %cst_68 = arith.constant 5.000000e-01 : f32
    %177 = vector.broadcast %cst_68 : f32 to vector<15x128xf32>
    %178 = arith.mulf %177, %176 : vector<15x128xf32>
    %179 = arith.mulf %166, %178 : vector<15x128xf32>
    %180 = arith.truncf %179 : vector<15x128xf32> to vector<15x128xbf16>
    %c0_69 = arith.constant 0 : index
    %c0_70 = arith.constant 0 : index
    %181 = vector.load %arg14[%c0_69, %c0_70] : memref<128x32xbf16, #tpu.memory_space<vmem>>, vector<128x32xbf16>
    %cst_71 = arith.constant dense<0.000000e+00> : vector<15x32xf32>
    %182 = tpu.matmul %180, %181, %cst_71 {dimension_numbers = #tpu.dot_dimension_numbers<[1], [0], [0], [1], [0, 0, 1, 1], [], []>} : vector<15x128xbf16>, vector<128x32xbf16>, vector<15x32xf32> -> vector<15x32xf32>
    %c0_72 = arith.constant 0 : index
    %c0_73 = arith.constant 0 : index
    %183 = vector.load %arg15[%c0_72, %c0_73] : memref<1x32xf32, #tpu.memory_space<vmem>>, vector<1x32xf32>
    %184 = vector.broadcast %183 : vector<1x32xf32> to vector<15x32xf32>
    %185 = arith.addf %182, %184 : vector<15x32xf32>
    %186 = arith.addf %132, %185 : vector<15x32xf32>
    %c0_74 = arith.constant 0 : index
    %c0_75 = arith.constant 0 : index
    %c0_76 = arith.constant 0 : index
    %187 = vector.load %arg16[%c0_74, %c0_75, %c0_76] : memref<1x15x32xf32, #tpu.memory_space<vmem>>, vector<1x15x32xf32>
    %188 = vector.shape_cast %187 : vector<1x15x32xf32> to vector<15x32xf32>
    %189 = vector.shape_cast %186 : vector<15x32xf32> to vector<1x15x32xf32>
    tpu.vector_store %arg16[%c0_74, %c0_75, %c0_76], %189 {strides = array<i32>} : memref<1x15x32xf32, #tpu.memory_space<vmem>>, vector<1x15x32xf32>,
    return
  }
  func.func @transform_0(%arg0: i32) -> (i32, i32, i32) {
    %c0_i32 = arith.constant 0 : i32
    %c0_i32_0 = arith.constant 0 : i32
    %c0_i32_1 = arith.constant 0 : i32
    return %arg0, %c0_i32, %c0_i32_0 : i32, i32, i32
  }
  func.func @transform_1(%arg0: i32) -> (i32, i32, i32) {
    %c0_i32 = arith.constant 0 : i32
    %c0_i32_0 = arith.constant 0 : i32
    %c0_i32_1 = arith.constant 0 : i32
    return %arg0, %c0_i32, %c0_i32_0 : i32, i32, i32
  }
  func.func @transform_2(%arg0: i32) -> (i32, i32) {
    %c0_i32 = arith.constant 0 : i32
    %c0_i32_0 = arith.constant 0 : i32
    %c0_i32_1 = arith.constant 0 : i32
    return %c0_i32, %c0_i32_0 : i32, i32
  }
  func.func @transform_3(%arg0: i32) -> (i32, i32) {
    %c0_i32 = arith.constant 0 : i32
    %c0_i32_0 = arith.constant 0 : i32
    %c0_i32_1 = arith.constant 0 : i32
    return %c0_i32, %c0_i32_0 : i32, i32
  }
  func.func @transform_4(%arg0: i32) -> (i32, i32) {
    %c0_i32 = arith.constant 0 : i32
    %c0_i32_0 = arith.constant 0 : i32
    %c0_i32_1 = arith.constant 0 : i32
    return %c0_i32, %c0_i32_0 : i32, i32
  }
  func.func @transform_5(%arg0: i32) -> (i32, i32) {
    %c0_i32 = arith.constant 0 : i32
    %c0_i32_0 = arith.constant 0 : i32
    %c0_i32_1 = arith.constant 0 : i32
    return %c0_i32, %c0_i32_0 : i32, i32
  }
  func.func @transform_6(%arg0: i32) -> (i32, i32) {
    %c0_i32 = arith.constant 0 : i32
    %c0_i32_0 = arith.constant 0 : i32
    %c0_i32_1 = arith.constant 0 : i32
    return %c0_i32, %c0_i32_0 : i32, i32
  }
  func.func @transform_7(%arg0: i32) -> (i32, i32) {
    %c0_i32 = arith.constant 0 : i32
    %c0_i32_0 = arith.constant 0 : i32
    %c0_i32_1 = arith.constant 0 : i32
    return %c0_i32, %c0_i32_0 : i32, i32
  }
  func.func @transform_8(%arg0: i32) -> (i32, i32) {
    %c0_i32 = arith.constant 0 : i32
    %c0_i32_0 = arith.constant 0 : i32
    %c0_i32_1 = arith.constant 0 : i32
    return %c0_i32, %c0_i32_0 : i32, i32
  }
  func.func @transform_9(%arg0: i32) -> (i32, i32) {
    %c0_i32 = arith.constant 0 : i32
    %c0_i32_0 = arith.constant 0 : i32
    %c0_i32_1 = arith.constant 0 : i32
    return %c0_i32, %c0_i32_0 : i32, i32
  }
  func.func @transform_10(%arg0: i32) -> (i32, i32) {
    %c0_i32 = arith.constant 0 : i32
    %c0_i32_0 = arith.constant 0 : i32
    %c0_i32_1 = arith.constant 0 : i32
    return %c0_i32, %c0_i32_0 : i32, i32
  }
  func.func @transform_11(%arg0: i32) -> (i32, i32) {
    %c0_i32 = arith.constant 0 : i32
    %c0_i32_0 = arith.constant 0 : i32
    %c0_i32_1 = arith.constant 0 : i32
    return %c0_i32, %c0_i32_0 : i32, i32
  }
  func.func @transform_12(%arg0: i32) -> (i32, i32) {
    %c0_i32 = arith.constant 0 : i32
    %c0_i32_0 = arith.constant 0 : i32
    %c0_i32_1 = arith.constant 0 : i32
    return %c0_i32, %c0_i32_0 : i32, i32
  }
  func.func @transform_13(%arg0: i32) -> (i32, i32) {
    %c0_i32 = arith.constant 0 : i32
    %c0_i32_0 = arith.constant 0 : i32
    %c0_i32_1 = arith.constant 0 : i32
    return %c0_i32, %c0_i32_0 : i32, i32
  }
  func.func @transform_14(%arg0: i32) -> (i32, i32) {
    %c0_i32 = arith.constant 0 : i32
    %c0_i32_0 = arith.constant 0 : i32
    %c0_i32_1 = arith.constant 0 : i32
    return %c0_i32, %c0_i32_0 : i32, i32
  }
  func.func @transform_15(%arg0: i32) -> (i32, i32, i32) {
    %c0_i32 = arith.constant 0 : i32
    %c0_i32_0 = arith.constant 0 : i32
    %c0_i32_1 = arith.constant 0 : i32
    return %arg0, %c0_i32, %c0_i32_0 : i32, i32, i32
  }
}

</mosaic_0001>

<bundles_post_ra>
// kernel: tpu_custom_call.1
= control target key start
LH: loop header
LB: loop body
LE: loop exit
PB: predicated region body
PF: predicated region fallthrough
CT: control target
= control target key end

     0   :  { %6 = vsyncpa [#allocation3], 0  ;;  %s105_s0 = inlined_call_operand.hbm [shape: f32[8,128], index: 0, kind: input, shape index: {}]   ;;  %s106_s1 = inlined_call_operand.hbm [shape: f32[8,128], index: 1, kind: output, shape index: {}]  }
   0x1   :  { %7 = vsyncpa [#allocation4], 0  ;;  %s87_s6 = smov [#allocation2]  }
   0x2   :  { %s14_s7 = sshll.u32 %s87_s6, 4  ;;  %s15_s7 = int_to_ptr.vmem [resolvable:$true] %s14_s7 }
   0x3   :  { %s51_s8 = scalar_lea.vmem %s15_s7, 128  ;;  %p56_p1 = scmp.lt.s32.totalorder %s15_s7, %s15_s7 }
   0x4   :  { %p52_p0 = scmp.ne.s32.totalorder %s15_s7, %s51_s8  ;;  %p57_p2 = scmp.lt.s32.totalorder %s51_s8, %s51_s8 }
   0x6   :  { %p58_p3 = por %p57_p2, %p56_p1 }
   0x8   :  { %p59_p4 = pnand %p58_p3, %p52_p0 }
   0xa   :  { %62 = shalt.err (!%p59_p4)
}
   0xb   :  { %17 = dma.hbm_to_vmem [thread:$0]  %s105_s0, 128, %s15_s7, [#allocation3]  }
   0xc   :  { %83 = dma.done.wait [#allocation3], 128  }
   0xd   :  { %84 = vsyncadd [#allocation3], 4294967168  ;;  %v21_v0 = vld [vmem:[#allocation2] sm:$0xff]  ;;  %s88_s11 = smov [#allocation5]  }
   0xe   :  { %41 = verf.f32 %v21_v0  ;;  %s30_s12 = sshll.u32 %s88_s11, 4  ;;  %s31_s12 = int_to_ptr.vmem [resolvable:$true] %s30_s12 }
   0xf   :  { %s63_s13 = scalar_lea.vmem %s31_s12, 128  ;;  %p68_p6 = scmp.lt.s32.totalorder %s31_s12, %s31_s12 }
  0x10   :  { %p64_p5 = scmp.ne.s32.totalorder %s31_s12, %s63_s13  ;;  %p69_p7 = scmp.lt.s32.totalorder %s63_s13, %s63_s13 }
  0x12   :  { %p70_p8 = por %p69_p7, %p68_p6 }
  0x14   :  { %p71_p9 = pnand %p70_p8, %p64_p5 }
  0x1b   :  { %v42_v1 = vpop.eup %41 }
  0x1c   :  { %23 = vst [vmem:[#allocation5] sm:$0xff] %v42_v1 }
  0x1d   :  { %74 = shalt.err (!%p71_p9)
}
  0x1e   :  { %33 = dma.vmem_to_hbm [thread:$0]  %s31_s12, 128, %s106_s1, [#allocation4]  }
  0x1f   :  { %85 = dma.done.wait [#allocation4], 128  }
  0x20   :  { %86 = vsyncadd [#allocation4], 4294967168 }
  0x21   :  { %37 = vsyncpa [#allocation3], 1 }
  0x22   :  { %38 = vsyncpa [#allocation4], 1 }

// kernel: tpu_custom_call.1
= control target key start
LH: loop header
LB: loop body
LE: loop exit
PB: predicated region body
PF: predicated region fallthrough
CT: control target
= control target key end

     0   :  { %s3635_s18 = smov 0   ;;  %s4133_s0 = inlined_call_operand.vmem [shape: f32[2,15,32], index: 0, kind: input, shape index: {}]   ;;  %s4134_s1 = inlined_call_operand.vmem [shape: f32[2,8,32], index: 1, kind: input, shape index: {}]   ;;  %s4135_s2 = inlined_call_operand.vmem [shape: f32[2,32], index: 2, kind: input, shape index: {}]   ;;  %s4136_s3 = inlined_call_operand.vmem [shape: f32[2,32], index: 3, kind: input, shape index: {}]   ;;  %s4137_s4 = inlined_call_operand.vmem [shape: bf16[32,32], index: 4, kind: input, shape index: {}]   ;;  %s4138_s5 = inlined_call_operand.vmem [shape: f32[1,32], index: 5, kind: input, shape index: {}]   ;;  %s4139_s6 = inlined_call_operand.vmem [shape: bf16[32,32], index: 6, kind: input, shape index: {}]   ;;  %s4140_s7 = inlined_call_operand.vmem [shape: f32[1,32], index: 7, kind: input, shape index: {}]   ;;  %s4141_s8 = inlined_call_operand.vmem [shape: bf16[32,32], index: 8, kind: input, shape index: {}]   ;;  %s4142_s9 = inlined_call_operand.vmem [shape: f32[1,32], index: 9, kind: input, shape index: {}]   ;;  %s4143_s10 = inlined_call_operand.vmem [shape: f32[2,32], index: 10, kind: input, shape index: {}]   ;;  %s4144_s11 = inlined_call_operand.vmem [shape: bf16[32,128], index: 11, kind: input, shape index: {}]   ;;  %s4145_s12 = inlined_call_operand.vmem [shape: f32[1,128], index: 12, kind: input, shape index: {}]   ;;  %s4146_s13 = inlined_call_operand.vmem [shape: bf16[128,32], index: 13, kind: input, shape index: {}]   ;;  %s4147_s14 = inlined_call_operand.vmem [shape: f32[1,32], index: 14, kind: input, shape index: {}]   ;;  %s4148_s15 = inlined_call_operand.vmem [shape: f32[2,15,32], index: 15, kind: output, shape index: {}]  }
   0x1 LB: > { %s3263_s19 = sadd.s32 4294967295, %s3542_s18   ;;  %p3267_p0 = scmp.ge.s32.totalorder %s3542_s18, 1  ;;  %s3542_s18 = sphi %s3635_s18, %s25_s18  }
   0x2   : > { %p446_p1 = scmp.lt.s32.totalorder %s3542_s18, 3 }
   0x4   : > { %p447_p2 = pnand %p3267_p0, %p446_p1 }
   0x5   : > { %p498_p3 = scmp.lt.s32.totalorder (!%p447_p2), %s3263_s19, 1  ;;  %s3546_s26 = smov (!%p447_p2), 120  }
   0x6   : > { %450 = sbr.rel (%p447_p2) target bundleno = 2744 (0xab8), region = 80  ;;  %s3552_s28 = smov (!%p447_p2), 104  }
   0x7   : > { %s3553_s29 = smov (!%p447_p2), 8   ;;  %s3554_s22 = smov (!%p447_p2), 16  }
   0xb   : > { %vm518_vm0 = vcmask 261120   ;;  %s4150_s19 = smov (!%p498_p3, %s3263_s19), 1  ;;  %vm522_vm1 = vcmask 260096   ;;  %v3472_v21 = vld [vmem:[%s4137_s4 + $0x8] sm:$0xff]   ;;  %v3544_v22 = vmov 0.0   ;;  %v3473_v23 = vld [vmem:[%s4137_s4] sm:$0xff]  }
   0xc   : > { %s3338_s20 = sshll.u32 %s4150_s19, 4  ;;  %s3270_s21 = sshll.u32 %s4150_s19, 3  ;;  %3373 = vmatprep.subr.bf16.mxu1 %v3544_v22  ;;  %vm3545_vm2 = vmmov 0   ;;  %v3273_v35 = vld [vmem:[%s4135_s2] ss:$0 sm:$0xff]  ;;  %v3474_v46 = vld [vmem:[%s4139_s6 + $0x8] sm:$0xff]  }
   0xd   : > { %s3652_s24 = scalar_lea.vmem %s4133_s0, %s3338_s20  ;;  %s506_s27 = scalar_lea.vmem %s4134_s1, %s3270_s21  ;;  %3374 = vmatpush3.bf16.msra.mxu1 %v3472_v21  ;;  %3377 = vmatprep.mubr.msk.bf16.mxu1 %vm3545_vm2, %v3544_v22  ;;  %v3274_v39 = vld [vmem:[%s4135_s2 + $0x1] ss:$0 sm:$0xff]  ;;  %v3275_v42 = vld [vmem:[%s4136_s3] ss:$0 sm:$0xff]  ;;  %vm1219_vm3 = vcmask 64512   ;;  %vm1291_vm4 = vcmask 62464  }
   0xe   : > { %v513_v0 = vld [vmem:[%s3652_s24] sm:$0xff]  ;;  %v514_v1 = vld [vmem:[%s3652_s24 + $0x8] sm:$0x7f]  ;;  %3375 = vmatprep.subr.bf16.mxu1 %v3544_v22  ;;  %vm1338_vm5 = vcmask 1043456   ;;  %vm1793_vm6 = vcmask 130048   ;;  %vm1795_vm7 = vcmask 129024   ;;  %s511_s16 = scalar_lea.vmem %s4148_s15, %s3338_s20 }
   0xf   : > { %v519_v2 = vsel %vm518_vm0, %v513_v0, 0.0  ;;  %v523_v3 = vsel %vm522_vm1, %v514_v1, 0.0  ;;  %v515_v4 = vld [vmem:[%s506_s27] sm:$0xff]  ;;  %s3547_s27 = smov 112   ;;  %vm2877_vm8 = vcmask 261248   ;;  %vm2879_vm9 = vcmask 260224  }
  0x10   : > { %520 = vadd.xlane.f32.xlu0 %v519_v2  ;;  %v562_v5 = vsel %vm518_vm0, %v515_v4, 0.0  ;;  %v3276_v49 = vld [vmem:[%s4136_s3 + $0x1] ss:$0 sm:$0xff]  ;;  %v3277_v54 = vld [vmem:[%s4138_s5] ss:$0 sm:$0xff] }
  0x11   : > { %3376 = vmatpush3.bf16.msra.mxu1 %v3473_v23  ;;  %v3475_v50 = vld [vmem:[%s4139_s6] sm:$0xff]  }
  0x12   : > { %3381 = vmatprep.subr.bf16.mxu1 %v3544_v22  ;;  %v3281_v60 = vld [vmem:[%s4140_s7] ss:$0 sm:$0xff] }
  0x14   : > { %524 = vadd.xlane.f32.xlu0 %v523_v3 }
  0x18   : > { %563 = vadd.xlane.f32.xlu0 %v562_v5  ;;  %v3548_v5 = vmov 1983009808  }
  0x99   : > { %v521_v6 = vpop.xlane.xlu0 %520 }
  0x9a   : > { %v527_v7 = vmul.f32 0.03125, %v521_v6  ;;  %v727_v6 = vunpack.c.l.s4 %v3548_v5 }
  0x9c   : > { %v529_v8 = vsub.f32 %v513_v0, %v527_v7  ;;  %v729_v7 = vlaneseq }
  0x9d   : > { %v525_v9 = vpop.xlane.xlu0 %524 }
  0x9e   : > { %v528_v10 = vmul.f32 0.03125, %v525_v9  ;;  %v531_v11 = vmul.f32 %v529_v8, %v529_v8  ;;  %v3713_v9 = vshrl.u32 %v729_v7, 7 }
  0xa0   : > { %v530_v12 = vsub.f32 %v514_v1, %v528_v10  ;;  %v533_v13 = vsel %vm518_vm0, %v531_v11, 0.0  ;;  %v3549_v10 = vmov 1934713408  }
  0xa1   : > { %534 = vadd.xlane.f32.xlu1 %v533_v13  ;;  %v564_v14 = vpop.xlane.xlu0 %563  ;;  %v742_v11 = vunpack.c.l.s4 %v3549_v10  ;;  %v3550_v13 = vmov 0  }
  0xa2   : > { %v565_v15 = vmul.f32 0.03125, %v564_v14  ;;  %v532_v16 = vmul.f32 %v530_v12, %v530_v12 }
  0xa4   : > { %v566_v17 = vsub.f32 %v515_v4, %v565_v15  ;;  %v536_v18 = vsel %vm522_vm1, %v532_v16, 0.0  ;;  %v743_v15 = vunpack.c.0.s8 %v742_v11 }
  0xa5   : > { %537 = vadd.xlane.f32.xlu1 %v536_v18 }
  0xa6   : > { %v567_v19 = vmul.f32 %v566_v17, %v566_v17  ;;  %v3722_v18 = vsub.s32 %v743_v15, %v3713_v9 }
  0xa8   : > { %v568_v20 = vsel %vm518_vm0, %v567_v19, 0.0 }
  0xa9   : > { %569 = vadd.xlane.f32.xlu1 %v568_v20 }
 0x12a   : > { %v535_v24 = vpop.xlane.xlu1 %534 }
 0x12b   : > { %v539_v25 = vmul.f32 0.03125, %v535_v24 }
 0x12d   : > { %v541_v26 = vadd.f32 1e-05, %v539_v25 }
 0x12e   : > { %v538_v27 = vpop.xlane.xlu1 %537 }
 0x12f   : > { %3488 = vrsqrt.f32 %v541_v26  ;;  %v540_v28 = vmul.f32 0.03125, %v538_v27 }
 0x131   : > { %v542_v29 = vadd.f32 1e-05, %v540_v28 }
 0x132   : > { %v570_v30 = vpop.xlane.xlu1 %569 }
 0x133   : > { %3490 = vrsqrt.f32 %v542_v29  ;;  %v571_v31 = vmul.f32 0.03125, %v570_v30 }
 0x135   : > { %v572_v32 = vadd.f32 1e-05, %v571_v31 }
 0x137   : > { %3492 = vrsqrt.f32 %v572_v32 }
 0x13c   : > { %v3489_v33 = vpop.eup %3488 }
 0x13d   : > { %v545_v34 = vmul.f32 %v3489_v33, %v529_v8  ;;  %v728_v8 = vunpack.c.0.s8 %v727_v6 }
 0x13f   : > { %v551_v38 = vmul.f32 %v3273_v35, %v545_v34 }
 0x140   : > { %v3491_v36 = vpop.eup %3490 }
 0x141   : > { %v546_v37 = vmul.f32 %v3491_v36, %v530_v12  ;;  %v557_v44 = vadd.f32 %v3274_v39, %v551_v38  ;;  %v3716_v12 = vsub.s32 %v728_v8, %v3713_v9 }
 0x143   : > { %v552_v40 = vmul.f32 %v3273_v35, %v546_v37  ;;  %v3551_v37 = vmov 1966171168  }
 0x144   : > { %v3493_v41 = vpop.eup %3492  ;;  %v981_v38 = vunpack.c.l.s4 %v3551_v37 }
 0x145   : > { %v574_v43 = vmul.f32 %v3493_v41, %v566_v17  ;;  %v558_v45 = vadd.f32 %v3274_v39, %v552_v40 }
 0x147   : > { %v559_v47 = vpack.c.bf16 %v558_v45, %v557_v44  ;;  %v579_v48 = vmul.f32 %v3275_v42, %v574_v43 }
 0x149   : > { %3378 = vmatmul.mubr.msk.bf16.vlgmr.msra.gmra.mxu1 %vm518_vm0, %v559_v47  ;;  %v584_v51 = vadd.f32 %v3276_v49, %v579_v48 }
 0x14a   : > { %3382 = vmatpush3.bf16.msra.mxu1 %v3474_v46  ;;  %3385 = vmatprep.mubr.msk.bf16.mxu1 %vm3545_vm2, %v3544_v22 }
 0x14b   : > { %3383 = vmatprep.subr.bf16.mxu1 %v3544_v22  ;;  %v585_v52 = vpack.c.bf16 %v584_v51, %v584_v51 }
 0x14e   : > { %3384 = vmatpush3.bf16.msra.mxu1 %v3475_v50 }
 0x151   : > { %3386 = vmatmul.mubr.msk.bf16.vlgmr.msra.gmra.mxu1 %vm518_vm0, %v585_v52 }
 0x209   : > { %v646_v53 = vpop.f32.mrf.mxu1 }
 0x20a   : > { %v647_v57 = vadd.f32 %v3277_v54, %v646_v53 }
 0x20b   : > { %v3379_v55 = vpop.f32.mrf.mxu1 }
 0x20d   : > { %v649_v56 = vpop.f32.mrf.mxu1 }
 0x20e   : > { %v650_v58 = vadd.f32 %v3277_v54, %v649_v56 }
 0x20f   : > { %v3380_v59 = vpop.f32.mrf.mxu1 }
 0x210   : > { %v719_v61 = vpack.c.bf16 %v650_v58, %v647_v57 }
 0x211   : > { %v713_v62 = vpop.f32.mrf.mxu1 }
 0x212   : > { %v714_v63 = vadd.f32 %v3281_v60, %v713_v62  ;;  %722 = vrot.lane.b32.xlu0 %v719_v61, %s3546_s26  ;;  %1797 = vrot.lane.b32.xlu1 %v719_v61, %s3547_s27  ;;  %v725_v14 = vcombine.high %v719_v61, %v3550_v13  ;;  %v732_v16 = vrot.slane %v719_v61, %v3716_v12 }
 0x213   : > { %v3387_v0 = vpop.f32.mrf.mxu1 }
 0x214   : > { %v3707_v1 = vpack.c.bf16 %v714_v63, %v714_v63  ;;  %v739_v17 = vrot.slane %v725_v14, %v3716_v12  ;;  %v740_v19 = vcombine.high %v732_v16, %v3550_v13  ;;  %v747_v21 = vrot.slane %v732_v16, %v3722_v18 }
 0x215   : > { %v716_v2 = vpop.f32.mrf.mxu1 }
 0x216   : > { %3449 = vmatprep.subr.msk.bf16.mxu1 %vm1219_vm3, %v3707_v1  ;;  %v1227_v3 = vsel %vm1219_vm3, %v3707_v1, 0  ;;  %v755_v23 = vcombine.high %v739_v17, %v3550_v13  ;;  %v754_v26 = vrot.slane %v740_v19, %v3722_v18  ;;  %v762_v28 = vrot.slane %v739_v17, %v3722_v18 }
 0x217   : > { %v3388_v4 = vpop.f32.mrf.mxu1  ;;  %3390 = vmatpush3.bf16.xpose.msra.mxu1 %v1227_v3  ;;  %v770_v32 = vcombine.high %v747_v21, %v3550_v13  ;;  %v827_v40 = vshrl.u32 %v747_v21, 16 }
 0x218   : > { %v769_v31 = vrot.slane %v755_v23, %v3722_v18  ;;  %v771_v33 = vcombine.high %v754_v26, %v3550_v13  ;;  %v772_v39 = vcombine.high %v762_v28, %v3550_v13  ;;  %v843_v45 = vshrl.u32 %v754_v26, 16 }
 0x219   : > { %v835_v44 = vshrl.u32 %v770_v32, 16  ;;  %v859_v46 = vshrl.u32 %v762_v28, 16 }
 0x21a   : > { %v773_v43 = vcombine.high %v769_v31, %v3550_v13  ;;  %v851_v47 = vshrl.u32 %v771_v33, 16  ;;  %v874_v48 = vshrl.u32 %v769_v31, 16 }
 0x284   : > { %v723_v20 = vpop.permute.xlu0 %722 }
 0x285   : > { %v774_v24 = vcombine.high %v723_v20, %v3550_v13  ;;  %v781_v25 = vrot.slane %v723_v20, %v3716_v12  ;;  %1799 = vrot.lane.b32.xlu1 %v723_v20, %s3547_s27  ;;  %v867_v20 = vshrl.u32 %v772_v39, 16 }
 0x287   : > { %v788_v27 = vrot.slane %v774_v24, %v3716_v12  ;;  %v789_v29 = vcombine.high %v781_v25, %v3550_v13  ;;  %v796_v30 = vrot.slane %v781_v25, %v3722_v18 }
 0x289   : > { %2297 = vrot.lane.b32.xlu1 %v3707_v1, %s3546_s26  ;;  %v803_v34 = vrot.slane %v789_v29, %v3722_v18  ;;  %v804_v35 = vcombine.high %v788_v27, %v3550_v13  ;;  %v811_v36 = vrot.slane %v788_v27, %v3722_v18  ;;  %v819_v42 = vcombine.high %v796_v30, %v3550_v13 }
 0x28a   : > { %v828_v52 = vshrl.u32 %v796_v30, 16  ;;  %v825_v55 = vpack.i.b16 %v796_v30, %v747_v21 }
 0x28b   : > { %v818_v41 = vrot.slane %v804_v35, %v3722_v18  ;;  %v820_v49 = vcombine.high %v803_v34, %v3550_v13  ;;  %v821_v50 = vcombine.high %v811_v36, %v3550_v13  ;;  %v836_v53 = vshrl.u32 %v819_v42, 16 }
 0x28c   : > { %v841_v54 = vpack.i.b16 %v803_v34, %v754_v26  ;;  %v844_v56 = vshrl.u32 %v803_v34, 16  ;;  %v829_v59 = vpack.i.b16 %v828_v52, %v827_v40  ;;  %v833_v60 = vpack.i.b16 %v819_v42, %v770_v32 }
 0x28d   : > { %v822_v51 = vcombine.high %v818_v41, %v3550_v13  ;;  %v849_v57 = vpack.i.b16 %v820_v49, %v771_v33  ;;  %v852_v58 = vshrl.u32 %v820_v49, 16  ;;  %v857_v61 = vpack.i.b16 %v811_v36, %v762_v28 }
 0x28e   : > { %v860_v62 = vshrl.u32 %v811_v36, 16  ;;  %v837_v63 = vpack.i.b16 %v836_v53, %v835_v44  ;;  %v845_v0 = vpack.i.b16 %v844_v56, %v843_v45  ;;  %v872_v3 = vpack.i.b16 %v818_v41, %v769_v31 }
 0x28f   : > { %v853_v2 = vpack.i.b16 %v852_v58, %v851_v47  ;;  %v865_v4 = vpack.i.b16 %v821_v50, %v772_v39  ;;  %v875_v5 = vshrl.u32 %v818_v41, 16  ;;  %v880_v6 = vpack.i.b16 %v822_v51, %v773_v43 }
 0x290   : > { %v882_v7 = vcombine.low %v825_v55, %v841_v54  ;;  %v868_v8 = vshrl.u32 %v821_v50, 16  ;;  %v890_v10 = vcombine.low %v833_v60, %v849_v57  ;;  %v898_v11 = vcombine.low %v857_v61, %v872_v3 }
 0x291   : > { %v931_v14 = vcombine.low %v829_v59, %v845_v0  ;;  %v861_v15 = vpack.i.b16 %v860_v62, %v859_v46  ;;  %v876_v16 = vpack.i.b16 %v875_v5, %v874_v48  ;;  %v906_v17 = vcombine.low %v865_v4, %v880_v6 }
 0x292   : > { %v939_v19 = vcombine.low %v837_v63, %v853_v2  ;;  %v889_v21 = vrot.slane %v882_v7, %v3716_v12  ;;  %v897_v23 = vrot.slane %v890_v10, %v3716_v12  ;;  %v905_v24 = vrot.slane %v898_v11, %v3716_v12 }
 0x293   : > { %v913_v25 = vrot.slane %v906_v17, %v3716_v12  ;;  %v938_v26 = vrot.slane %v931_v14, %v3716_v12  ;;  %v947_v28 = vcombine.low %v861_v15, %v876_v16  ;;  %v869_v30 = vpack.i.b16 %v868_v8, %v867_v20 }
 0x294   : > { %v946_v27 = vrot.slane %v939_v19, %v3716_v12  ;;  %v914_v29 = vcombine.low %v889_v21, %v897_v23  ;;  %v982_v34 = vunpack.c.0.s8 %v981_v38 }
 0x295   : > { %v922_v31 = vcombine.low %v905_v24, %v913_v25  ;;  %v954_v32 = vrot.slane %v947_v28, %v3716_v12 }
 0x296   : > { %v956_v33 = vcombine.low %v938_v26, %v946_v27  ;;  %v921_v35 = vrot.slane %v914_v29, %v3722_v18  ;;  %v3762_v42 = vsub.s32 %v982_v34, %v3713_v9 }
 0x297   : > { %v929_v36 = vrot.slane %v922_v31, %v3722_v18  ;;  %v964_v39 = vcombine.low %v954_v32, %v869_v30 }
 0x298   : > { %v963_v37 = vrot.slane %v956_v33, %v3722_v18 }
 0x299   : > { %v930_v40 = vcombine.low %v921_v35, %v929_v36  ;;  %v971_v41 = vrot.slane %v964_v39, %v3722_v18 }
 0x29b   : > { %v972_v43 = vcombine.low %v963_v37, %v971_v41  ;;  %v976_v44 = vshrl.u32 %v930_v40, 16 }
 0x29d   : > { %v977_v45 = vshrl.u32 %v972_v43, 16  ;;  %v975_v46 = vpack.i.b16 %v972_v43, %v930_v40 }
 0x29f   : > { %v978_v47 = vpack.i.b16 %v977_v45, %v976_v44  ;;  %v979_v48 = vcombine.high %v975_v46, %v975_v46  ;;  %v986_v38 = vrot.slane %v975_v46, %v3762_v42 }
 0x2a1   : > { %v1028_v49 = vcombine.high %v978_v47, %v978_v47  ;;  %v993_v50 = vrot.slane %v979_v48, %v3762_v42  ;;  %v994_v51 = vcombine.high %v986_v38, %v986_v38  ;;  %v1035_v52 = vrot.slane %v978_v47, %v3762_v42 }
 0x2a2   : > { %v1002_v9 = vrot.slane %v986_v38, %v3762_v42 }
 0x2a3   : > { %v1042_v53 = vrot.slane %v1028_v49, %v3762_v42  ;;  %v995_v54 = vcombine.high %v993_v50, %v993_v50  ;;  %v1016_v55 = vrot.slane %v994_v51, %v3762_v42  ;;  %v1043_v56 = vcombine.high %v1035_v52, %v1035_v52 }
 0x2a4   : > { %v1051_v57 = vrot.slane %v1035_v52, %v3762_v42  ;;  %v1009_v58 = vrot.slane %v993_v50, %v3762_v42 }
 0x2a5   : > { %v1023_v59 = vrot.slane %v995_v54, %v3762_v42  ;;  %v1122_v60 = vcombine.low %v1002_v9, %v1016_v55  ;;  %v3293_v61 = vcombine.high %v1002_v9, %v1016_v55  ;;  %v1044_v62 = vcombine.high %v1042_v53, %v1042_v53 }
 0x2a6   : > { %v1058_v63 = vrot.slane %v1042_v53, %v3762_v42  ;;  %v1065_v0 = vrot.slane %v1043_v56, %v3762_v42  ;;  %v1073_v2 = vcombine.high %v1051_v57, %v1051_v57  ;;  %v1093_v11 = vunpack.i.h.s16 %v1051_v57  ;;  %v1798_v53 = vpop.permute.xlu1 %1797 }
 0x2a7   : > { %v1027_v3 = vcombine.high %v1023_v59, %v1023_v59  ;;  %v1124_v4 = vcombine.low %v1009_v58, %v1023_v59  ;;  %v1132_v5 = vrot.slane %v1122_v60, %v3762_v42  ;;  %v1139_v6 = vrot.slane %v3293_v61, %v3762_v42 }
 0x2a8   : > { %v1072_v7 = vrot.slane %v1044_v62, %v3762_v42  ;;  %v1074_v8 = vcombine.high %v1058_v63, %v1058_v63  ;;  %v1075_v10 = vcombine.high %v1065_v0, %v1065_v0  ;;  %v1025_v14 = vcombine.high %v1009_v58, %v1009_v58 }
 0x2a9   : > { %v3285_v15 = vpack.i.b16 %v1051_v57, %v1027_v3  ;;  %v1146_v16 = vrot.slane %v1124_v4, %v3762_v42  ;;  %v1095_v17 = vunpack.i.h.s16 %v1065_v0  ;;  %v1097_v20 = vunpack.i.h.s16 %v1073_v2 }
 0x2aa   : > { %v1076_v19 = vcombine.high %v1072_v7, %v1072_v7  ;;  %v1099_v21 = vunpack.i.h.s16 %v1075_v10  ;;  %v1101_v23 = vunpack.i.h.s16 %v1058_v63  ;;  %v1154_v25 = vcombine.low %v1132_v5, %v1139_v6 }
 0x2ab   : > { %v1125_v24 = vcombine.low %v1025_v14, %v3285_v15  ;;  %v1103_v26 = vunpack.i.h.s16 %v1072_v7  ;;  %v1105_v27 = vunpack.i.h.s16 %v1074_v8  ;;  %v3286_v28 = vpack.i.b16 %v1065_v0, %v1093_v11 }
 0x2ac   : > { %v3287_v29 = vpack.i.b16 %v1073_v2, %v1095_v17  ;;  %v3288_v30 = vpack.i.b16 %v1075_v10, %v1097_v20  ;;  %v3289_v31 = vpack.i.b16 %v1058_v63, %v1099_v21  ;;  %v3290_v33 = vpack.i.b16 %v1072_v7, %v1101_v23 }
 0x2ad   : > { %v1153_v32 = vrot.slane %v1125_v24, %v3762_v42  ;;  %v3291_v34 = vpack.i.b16 %v1074_v8, %v1103_v26  ;;  %v3292_v35 = vpack.i.b16 %v1076_v19, %v1105_v27  ;;  %v1162_v44 = vrot.slane %v1154_v25, %v3762_v42 }
 0x2ae   : > { %v1171_v36 = vcombine.low %v3286_v28, %v3287_v29  ;;  %v1172_v37 = vcombine.low %v3288_v30, %v3289_v31  ;;  %v1803_v54 = vcombine.high %v1798_v53, %v3550_v13  ;;  %v1810_v9 = vrot.slane %v1798_v53, %v3716_v12 }
 0x2af   : > { %v1155_v39 = vcombine.low %v1146_v16, %v1153_v32  ;;  %v1173_v40 = vcombine.low %v3290_v33, %v3291_v34  ;;  %v1201_v47 = vrot.slane %v3292_v35, %v3762_v42 }
 0x2b0   : > { %v1180_v41 = vrot.slane %v1171_v36, %v3762_v42  ;;  %v1187_v43 = vrot.slane %v1172_v37, %v3762_v42  ;;  %v1817_v55 = vrot.slane %v1803_v54, %v3716_v12  ;;  %v1818_v56 = vcombine.high %v1810_v9, %v3550_v13 }
 0x2b1   : > { %v1169_v45 = vrot.slane %v1155_v39, %v3762_v42  ;;  %v1194_v46 = vrot.slane %v1173_v40, %v3762_v42  ;;  %v1825_v57 = vrot.slane %v1810_v9, %v3722_v18 }
 0x2b2   : > { %v1202_v48 = vcombine.low %v1180_v41, %v1187_v43  ;;  %v1833_v58 = vcombine.high %v1817_v55, %v3550_v13  ;;  %v1832_v59 = vrot.slane %v1818_v56, %v3722_v18  ;;  %v1840_v60 = vrot.slane %v1817_v55, %v3722_v18 }
 0x2b3   : > { %v1170_v38 = vcombine.low %v1162_v44, %v1169_v45  ;;  %v1203_v49 = vcombine.low %v1194_v46, %v1201_v47  ;;  %v1848_v62 = vcombine.high %v1825_v57, %v3550_v13  ;;  %v1905_v4 = vshrl.u32 %v1825_v57, 16 }
 0x2b4   : > { %v1210_v50 = vrot.slane %v1202_v48, %v3762_v42  ;;  %v1847_v61 = vrot.slane %v1833_v58, %v3722_v18  ;;  %v1849_v3 = vcombine.high %v1832_v59, %v3550_v13  ;;  %v1850_v5 = vcombine.high %v1840_v60, %v3550_v13 }
 0x2b5   : > { %3391 = vmatprep.mubr.msk.bf16.mxu1 %vm1219_vm3, %v1170_v38  ;;  %v1217_v51 = vrot.slane %v1203_v49, %v3762_v42  ;;  %v1913_v11 = vshrl.u32 %v1848_v62, 16  ;;  %v1921_v14 = vshrl.u32 %v1832_v59, 16  ;;  %v1937_v15 = vshrl.u32 %v1840_v60, 16 }
 0x2b6   : > { %v1851_v10 = vcombine.high %v1847_v61, %v3550_v13  ;;  %v1929_v23 = vshrl.u32 %v1849_v3, 16  ;;  %v1952_v24 = vshrl.u32 %v1847_v61, 16  ;;  %v1945_v58 = vshrl.u32 %v1850_v5, 16 }
 0x2b7   : > { %v1218_v52 = vcombine.low %v1210_v50, %v1217_v51 }
 0x2b9   : > { %3392 = vmatmul.mubr.msk.bf16.vlgmr.msra.gmra.mxu1 %vm1219_vm3, %v1218_v52 }
 0x2f7   : > { %v1800_v63 = vpop.permute.xlu1 %1799 }
 0x2f8   : > { %v1852_v0 = vcombine.high %v1800_v63, %v3550_v13  ;;  %v1859_v2 = vrot.slane %v1800_v63, %v3716_v12 }
 0x2fa   : > { %v1866_v6 = vrot.slane %v1852_v0, %v3716_v12  ;;  %v1867_v7 = vcombine.high %v1859_v2, %v3550_v13  ;;  %v1874_v8 = vrot.slane %v1859_v2, %v3722_v18 }
 0x2fb   : > { %v2298_v16 = vpop.permute.xlu1 %2297 }
 0x2fc   : > { %v1881_v17 = vrot.slane %v1867_v7, %v3722_v18  ;;  %v1882_v19 = vcombine.high %v1866_v6, %v3550_v13  ;;  %v1889_v20 = vrot.slane %v1866_v6, %v3722_v18  ;;  %v1897_v21 = vcombine.high %v1874_v8, %v3550_v13  ;;  %3451 = vmatprep.subr.msk.bf16.mxu0 %vm1219_vm3, %v2298_v16 }
 0x2fd   : > { %v1906_v25 = vshrl.u32 %v1874_v8, 16  ;;  %v2306_v26 = vsel %vm1219_vm3, %v2298_v16, 0  ;;  %v1903_v30 = vpack.i.b16 %v1874_v8, %v1825_v57 }
 0x2fe   : > { %v1896_v27 = vrot.slane %v1882_v19, %v3722_v18  ;;  %v1898_v28 = vcombine.high %v1881_v17, %v3550_v13  ;;  %v1899_v29 = vcombine.high %v1889_v20, %v3550_v13  ;;  %3402 = vmatpush3.bf16.xpose.msra.mxu0 %v2306_v26  ;;  %v1911_v31 = vpack.i.b16 %v1897_v21, %v1848_v62 }
 0x2ff   : > { %v1914_v32 = vshrl.u32 %v1897_v21, 16  ;;  %v1919_v33 = vpack.i.b16 %v1881_v17, %v1832_v59  ;;  %v1922_v34 = vshrl.u32 %v1881_v17, 16  ;;  %3413 = vmatprep.subr.bf16.mxu0 %v3544_v22  ;;  %v1907_v36 = vpack.i.b16 %v1906_v25, %v1905_v4 }
 0x300   : > { %v1900_v35 = vcombine.high %v1896_v27, %v3550_v13  ;;  %v1927_v37 = vpack.i.b16 %v1898_v28, %v1849_v3  ;;  %v1930_v39 = vshrl.u32 %v1898_v28, 16  ;;  %v1935_v43 = vpack.i.b16 %v1889_v20, %v1840_v60 }
 0x301   : > { %v1915_v40 = vpack.i.b16 %v1914_v32, %v1913_v11  ;;  %v1923_v41 = vpack.i.b16 %v1922_v34, %v1921_v14  ;;  %v1938_v44 = vshrl.u32 %v1889_v20, 16  ;;  %v1943_v46 = vpack.i.b16 %v1899_v29, %v1850_v5 }
 0x302   : > { %v1931_v45 = vpack.i.b16 %v1930_v39, %v1929_v23  ;;  %v1950_v47 = vpack.i.b16 %v1896_v27, %v1847_v61  ;;  %v1953_v48 = vshrl.u32 %v1896_v27, 16  ;;  %v1946_v38 = vshrl.u32 %v1899_v29, 16 }
 0x303   : > { %v1958_v49 = vpack.i.b16 %v1900_v35, %v1851_v10  ;;  %v1960_v50 = vcombine.low %v1903_v30, %v1919_v33  ;;  %v1968_v51 = vcombine.low %v1911_v31, %v1927_v37  ;;  %v1939_v52 = vpack.i.b16 %v1938_v44, %v1937_v15 }
 0x304   : > { %v1954_v53 = vpack.i.b16 %v1953_v48, %v1952_v24  ;;  %v1976_v54 = vcombine.low %v1935_v43, %v1950_v47  ;;  %v2009_v9 = vcombine.low %v1907_v36, %v1923_v41  ;;  %v2017_v57 = vcombine.low %v1915_v40, %v1931_v45 }
 0x305   : > { %v1967_v13 = vrot.slane %v1960_v50, %v3716_v12  ;;  %v1975_v55 = vrot.slane %v1968_v51, %v3716_v12  ;;  %v1984_v56 = vcombine.low %v1943_v46, %v1958_v49  ;;  %v1947_v2 = vpack.i.b16 %v1946_v38, %v1945_v58 }
 0x306   : > { %v1983_v59 = vrot.slane %v1976_v54, %v3716_v12  ;;  %v2025_v60 = vcombine.low %v1939_v52, %v1954_v53  ;;  %v2016_v63 = vrot.slane %v2009_v9, %v3716_v12  ;;  %v2024_v0 = vrot.slane %v2017_v57, %v3716_v12 }
 0x307   : > { %v1991_v61 = vrot.slane %v1984_v56, %v3716_v12  ;;  %v1992_v62 = vcombine.low %v1967_v13, %v1975_v55 }
 0x308   : > { %v2032_v3 = vrot.slane %v2025_v60, %v3716_v12  ;;  %v2034_v6 = vcombine.low %v2016_v63, %v2024_v0 }
 0x309   : > { %v2000_v4 = vcombine.low %v1983_v59, %v1991_v61  ;;  %v1999_v8 = vrot.slane %v1992_v62, %v3722_v18 }
 0x30a   : > { %v2042_v7 = vcombine.low %v2032_v3, %v1947_v2  ;;  %v2041_v10 = vrot.slane %v2034_v6, %v3722_v18 }
 0x30b   : > { %v2007_v5 = vrot.slane %v2000_v4, %v3722_v18 }
 0x30c   : > { %v2049_v11 = vrot.slane %v2042_v7, %v3722_v18 }
 0x30d   : > { %v2008_v14 = vcombine.low %v1999_v8, %v2007_v5 }
 0x30e   : > { %v2050_v15 = vcombine.low %v2041_v10, %v2049_v11 }
 0x30f   : > { %v2054_v16 = vshrl.u32 %v2008_v14, 16 }
 0x310   : > { %v2053_v17 = vpack.i.b16 %v2050_v15, %v2008_v14  ;;  %v2055_v19 = vshrl.u32 %v2050_v15, 16 }
 0x312   : > { %v2056_v20 = vpack.i.b16 %v2055_v19, %v2054_v16  ;;  %v2057_v21 = vcombine.high %v2053_v17, %v2053_v17  ;;  %v2064_v12 = vrot.slane %v2053_v17, %v3762_v42 }
 0x314   : > { %v2071_v23 = vrot.slane %v2057_v21, %v3762_v42  ;;  %v2072_v24 = vcombine.high %v2064_v12, %v2064_v12  ;;  %v2106_v25 = vcombine.high %v2056_v20, %v2056_v20  ;;  %v2113_v26 = vrot.slane %v2056_v20, %v3762_v42 }
 0x315   : > { %v2080_v28 = vrot.slane %v2064_v12, %v3762_v42 }
 0x316   : > { %v2073_v27 = vcombine.high %v2071_v23, %v2071_v23  ;;  %v2094_v18 = vrot.slane %v2072_v24, %v3762_v42  ;;  %v2120_v29 = vrot.slane %v2106_v25, %v3762_v42  ;;  %v2121_v30 = vcombine.high %v2113_v26, %v2113_v26 }
 0x317   : > { %v2129_v31 = vrot.slane %v2113_v26, %v3762_v42  ;;  %v2087_v32 = vrot.slane %v2071_v23, %v3762_v42 }
 0x318   : > { %v2101_v33 = vrot.slane %v2073_v27, %v3762_v42  ;;  %v2200_v34 = vcombine.low %v2080_v28, %v2094_v18  ;;  %v3309_v35 = vcombine.high %v2080_v28, %v2094_v18  ;;  %v2122_v36 = vcombine.high %v2120_v29, %v2120_v29 }
 0x319   : > { %v2136_v37 = vrot.slane %v2120_v29, %v3762_v42  ;;  %v2143_v39 = vrot.slane %v2121_v30, %v3762_v42  ;;  %v2151_v40 = vcombine.high %v2129_v31, %v2129_v31  ;;  %v2171_v38 = vunpack.i.h.s16 %v2129_v31 }
 0x31a   : > { %v2105_v41 = vcombine.high %v2101_v33, %v2101_v33  ;;  %v2202_v43 = vcombine.low %v2087_v32, %v2101_v33  ;;  %v2210_v44 = vrot.slane %v2200_v34, %v3762_v42  ;;  %v2217_v45 = vrot.slane %v3309_v35, %v3762_v42 }
 0x31b   : > { %v2150_v46 = vrot.slane %v2122_v36, %v3762_v42  ;;  %v2152_v47 = vcombine.high %v2136_v37, %v2136_v37  ;;  %v2153_v48 = vcombine.high %v2143_v39, %v2143_v39  ;;  %v2103_v49 = vcombine.high %v2087_v32, %v2087_v32 }
 0x31c   : > { %v3301_v50 = vpack.i.b16 %v2129_v31, %v2105_v41  ;;  %v2224_v51 = vrot.slane %v2202_v43, %v3762_v42  ;;  %v2173_v52 = vunpack.i.h.s16 %v2143_v39  ;;  %v2175_v54 = vunpack.i.h.s16 %v2151_v40 }
 0x31d   : > { %v2154_v53 = vcombine.high %v2150_v46, %v2150_v46  ;;  %v2177_v9 = vunpack.i.h.s16 %v2153_v48  ;;  %v2179_v13 = vunpack.i.h.s16 %v2136_v37  ;;  %v2232_v56 = vcombine.low %v2210_v44, %v2217_v45 }
 0x31e   : > { %v2203_v55 = vcombine.low %v2103_v49, %v3301_v50  ;;  %v2181_v57 = vunpack.i.h.s16 %v2150_v46  ;;  %v2183_v58 = vunpack.i.h.s16 %v2152_v47  ;;  %v3302_v59 = vpack.i.b16 %v2143_v39, %v2171_v38 }
 0x31f   : > { %v3303_v60 = vpack.i.b16 %v2151_v40, %v2173_v52  ;;  %v3304_v61 = vpack.i.b16 %v2153_v48, %v2175_v54  ;;  %v3305_v62 = vpack.i.b16 %v2136_v37, %v2177_v9  ;;  %v3306_v0 = vpack.i.b16 %v2150_v46, %v2179_v13 }
 0x320   : > { %v2231_v63 = vrot.slane %v2203_v55, %v3762_v42  ;;  %v3307_v2 = vpack.i.b16 %v2152_v47, %v2181_v57  ;;  %v3308_v3 = vpack.i.b16 %v2154_v53, %v2183_v58  ;;  %v2240_v11 = vrot.slane %v2232_v56, %v3762_v42 }
 0x321   : > { %v2249_v4 = vcombine.low %v3302_v59, %v3303_v60  ;;  %v2250_v6 = vcombine.low %v3304_v61, %v3305_v62 }
 0x322   : > { %v2233_v7 = vcombine.low %v2224_v51, %v2231_v63  ;;  %v2251_v8 = vcombine.low %v3306_v0, %v3307_v2  ;;  %v2279_v16 = vrot.slane %v3308_v3, %v3762_v42 }
 0x323   : > { %v2258_v5 = vrot.slane %v2249_v4, %v3762_v42  ;;  %v2265_v10 = vrot.slane %v2250_v6, %v3762_v42 }
 0x324   : > { %v2247_v14 = vrot.slane %v2233_v7, %v3762_v42  ;;  %v2272_v15 = vrot.slane %v2251_v8, %v3762_v42 }
 0x325   : > { %v2280_v17 = vcombine.low %v2258_v5, %v2265_v10 }
 0x326   : > { %v2248_v19 = vcombine.low %v2240_v11, %v2247_v14  ;;  %v2281_v20 = vcombine.low %v2272_v15, %v2279_v16 }
 0x327   : > { %v2288_v21 = vrot.slane %v2280_v17, %v3762_v42 }
 0x328   : > { %3403 = vmatprep.mubr.msk.bf16.mxu0 %vm1219_vm3, %v2248_v19  ;;  %v2295_v12 = vrot.slane %v2281_v20, %v3762_v42 }
 0x32a   : > { %v2296_v23 = vcombine.low %v2288_v21, %v2295_v12 }
 0x32c   : > { %3404 = vmatmul.mubr.msk.bf16.vlgmr.msra.gmra.mxu0 %vm1219_vm3, %v2296_v23 }
 0x32d   : > { %3417 = vmatprep.mubr.msk.bf16.mxu0 %vm3545_vm2, %v3544_v22 }
 0x379   : > { %v3393_v24 = vpop.f32.mrf.mxu1 }
 0x37a   : > { %v1280_v28 = vmul.f32 0.35355338, %v3393_v24 }
 0x37b   : > { %v1263_v25 = vpop.f32.mrf.mxu1 }
 0x37c   : > { %v1278_v26 = vmul.f32 0.35355338, %v1263_v25  ;;  %v1288_v32 = vsel %vm1219_vm3, %v1280_v28, -inf }
 0x37d   : > { %v3394_v27 = vpop.f32.mrf.mxu1 }
 0x37e   : > { %v1282_v18 = vsel %vm1219_vm3, %v1278_v26, -inf  ;;  %v1281_v31 = vmul.f32 0.35355338, %v3394_v27 }
 0x37f   : > { %1283 = vmax.xlane.f32.xlu0 %v1282_v18  ;;  %v1266_v29 = vpop.f32.mrf.mxu1 }
 0x380   : > { %v1279_v30 = vmul.f32 0.35355338, %v1266_v29  ;;  %v1292_v34 = vsel %vm1291_vm4, %v1281_v31, -inf }
 0x382   : > { %v1285_v33 = vsel %vm1219_vm3, %v1279_v30, -inf }
 0x383   : > { %1289 = vmax.xlane.f32.xlu0 %v1288_v32  ;;  %1286 = vmax.xlane.f32.xlu1 %v1285_v33 }
 0x387   : > { %1293 = vmax.xlane.f32.xlu0 %v1292_v34 }
 0x3ec   : > { %v3405_v35 = vpop.f32.mrf.mxu0 }
 0x3ed   : > { %v2359_v40 = vmul.f32 0.35355338, %v3405_v35 }
 0x3ee   : > { %v2342_v36 = vpop.f32.mrf.mxu0 }
 0x3ef   : > { %v2357_v37 = vmul.f32 0.35355338, %v2342_v36  ;;  %v2367_v46 = vsel %vm1219_vm3, %v2359_v40, -inf }
 0x3f0   : > { %v3406_v39 = vpop.f32.mrf.mxu0 }
 0x3f1   : > { %v2361_v41 = vsel %vm1219_vm3, %v2357_v37, -inf  ;;  %v2360_v45 = vmul.f32 0.35355338, %v3406_v39 }
 0x3f2   : > { %2362 = vmax.xlane.f32.xlu0 %v2361_v41  ;;  %v2345_v43 = vpop.f32.mrf.mxu0 }
 0x3f3   : > { %v2358_v44 = vmul.f32 0.35355338, %v2345_v43  ;;  %v2370_v48 = vsel %vm1291_vm4, %v2360_v45, -inf }
 0x3f5   : > { %v2364_v47 = vsel %vm1219_vm3, %v2358_v44, -inf }
 0x3f6   : > { %2368 = vmax.xlane.f32.xlu0 %v2367_v46  ;;  %2365 = vmax.xlane.f32.xlu1 %v2364_v47 }
 0x3fa   : > { %2371 = vmax.xlane.f32.xlu1 %v2370_v48 }
 0x408   : > { %v1284_v38 = vpop.xlane.xlu0 %1283 }
 0x409   : > { %v1295_v49 = vsub.f32 %v1278_v26, %v1284_v38 }
 0x40b   : > { %v1299_v53 = vmul.f32 1.442695, %v1295_v49 }
 0x40c   : > { %v1290_v50 = vpop.xlane.xlu0 %1289  ;;  %v1287_v51 = vpop.xlane.xlu1 %1286 }
 0x40d   : > { %v1297_v52 = vsub.f32 %v1280_v28, %v1290_v50  ;;  %v1296_v9 = vsub.f32 %v1279_v30, %v1287_v51 }
 0x40f   : > { %v1303_v54 = vmul.f32 1.442695, %v1297_v52  ;;  %v1301_v56 = vmul.f32 1.442695, %v1296_v9 }
 0x410   : > { %v1294_v13 = vpop.xlane.xlu0 %1293 }
 0x411   : > { %3494 = vpow2.f32 %v1303_v54  ;;  %v1298_v55 = vsub.f32 %v1281_v31, %v1294_v13 }
 0x412   : > { %3496 = vpow2.f32 %v1299_v53 }
 0x413   : > { %v1305_v57 = vmul.f32 1.442695, %v1298_v55 }
 0x415   : > { %3498 = vpow2.f32 %v1305_v57 }
 0x416   : > { %3500 = vpow2.f32 %v1301_v56 }
 0x41e   : > { %v3495_v58 = vpop.eup %3494 }
 0x41f   : > { %v1313_v59 = vsel %vm1219_vm3, %v3495_v58, 0.0  ;;  %v3497_v60 = vpop.eup %3496 }
 0x420   : > { %1314 = vadd.xlane.f32.xlu0 %v1313_v59  ;;  %v1307_v62 = vsel %vm1219_vm3, %v3497_v60, 0.0 }
 0x422   : > { %v3499_v61 = vpop.eup %3498 }
 0x423   : > { %v1316_v63 = vsel %vm1291_vm4, %v3499_v61, 0.0  ;;  %v3501_v0 = vpop.eup %3500 }
 0x424   : > { %1308 = vadd.xlane.f32.xlu0 %v1307_v62  ;;  %1317 = vadd.xlane.f32.xlu1 %v1316_v63  ;;  %v1310_v2 = vsel %vm1219_vm3, %v3501_v0, 0.0 }
 0x428   : > { %1311 = vadd.xlane.f32.xlu1 %v1310_v2 }
 0x47b   : > { %v2363_v3 = vpop.xlane.xlu0 %2362 }
 0x47c   : > { %v2373_v4 = vsub.f32 %v2357_v37, %v2363_v3 }
 0x47e   : > { %v2377_v5 = vmul.f32 1.442695, %v2373_v4 }
 0x47f   : > { %v2369_v6 = vpop.xlane.xlu0 %2368  ;;  %v2366_v7 = vpop.xlane.xlu1 %2365 }
 0x480   : > { %v2375_v8 = vsub.f32 %v2359_v40, %v2369_v6  ;;  %v2374_v11 = vsub.f32 %v2358_v44, %v2366_v7 }
 0x482   : > { %v2381_v10 = vmul.f32 1.442695, %v2375_v8  ;;  %v2379_v16 = vmul.f32 1.442695, %v2374_v11 }
 0x483   : > { %v2372_v14 = vpop.xlane.xlu1 %2371 }
 0x484   : > { %3502 = vpow2.f32 %v2381_v10  ;;  %v2376_v15 = vsub.f32 %v2360_v45, %v2372_v14 }
 0x485   : > { %3504 = vpow2.f32 %v2377_v5 }
 0x486   : > { %v2383_v17 = vmul.f32 1.442695, %v2376_v15 }
 0x488   : > { %3506 = vpow2.f32 %v2383_v17 }
 0x489   : > { %3508 = vpow2.f32 %v2379_v16 }
 0x491   : > { %v3503_v19 = vpop.eup %3502 }
 0x492   : > { %v2391_v20 = vsel %vm1219_vm3, %v3503_v19, 0.0  ;;  %v3505_v21 = vpop.eup %3504 }
 0x493   : > { %2392 = vadd.xlane.f32.xlu0 %v2391_v20  ;;  %v2385_v23 = vsel %vm1219_vm3, %v3505_v21, 0.0 }
 0x495   : > { %v3507_v12 = vpop.eup %3506 }
 0x496   : > { %v2394_v24 = vsel %vm1291_vm4, %v3507_v12, 0.0  ;;  %v3509_v25 = vpop.eup %3508 }
 0x497   : > { %2386 = vadd.xlane.f32.xlu0 %v2385_v23  ;;  %2395 = vadd.xlane.f32.xlu1 %v2394_v24  ;;  %v2388_v26 = vsel %vm1219_vm3, %v3509_v25, 0.0 }
 0x49b   : > { %2389 = vadd.xlane.f32.xlu1 %v2388_v26 }
 0x4a9   : > { %v1315_v27 = vpop.xlane.xlu0 %1314 }
 0x4aa   : > { %3510 = vrcp.f32 %v1315_v27 }
 0x4ac   : > { %2407 = vrot.lane.b32.xlu1 %v3707_v1, %s3552_s28 }
 0x4ad   : > { %1330 = vrot.lane.b32.xlu0 %v3707_v1, %s3547_s27  ;;  %v1309_v28 = vpop.xlane.xlu0 %1308  ;;  %v1318_v18 = vpop.xlane.xlu1 %1317 }
 0x4ae   : > { %3512 = vrcp.f32 %v1318_v18 }
 0x4af   : > { %3514 = vrcp.f32 %v1309_v28 }
 0x4b1   : > { %v1312_v29 = vpop.xlane.xlu1 %1311 }
 0x4b2   : > { %3516 = vrcp.f32 %v1312_v29 }
 0x4b7   : > { %v3511_v30 = vpop.eup %3510 }
 0x4b8   : > { %v1324_v33 = vmul.f32 %v3511_v30, %v3495_v58 }
 0x4bb   : > { %v3513_v31 = vpop.eup %3512 }
 0x4bc   : > { %v3515_v32 = vpop.eup %3514  ;;  %v1326_v34 = vmul.f32 %v3513_v31, %v3499_v61 }
 0x4bd   : > { %v1320_v37 = vmul.f32 %v3515_v32, %v3497_v60 }
 0x4be   : > { %v1328_v36 = vpack.c.bf16 %v1326_v34, %v1324_v33 }
 0x4bf   : > { %v3517_v35 = vpop.eup %3516 }
 0x4c0   : > { %v1322_v39 = vmul.f32 %v3517_v35, %v3501_v0 }
 0x4c2   : > { %v1327_v40 = vpack.c.bf16 %v1322_v39, %v1320_v37 }
 0x4c4   : > { %3397 = vmatprep.mubr.msk.bf16.mxu1 %vm1219_vm3, %v1327_v40 }
 0x51c   : > { %v2393_v1 = vpop.xlane.xlu0 %2392 }
 0x520   : > { %v2387_v41 = vpop.xlane.xlu0 %2386  ;;  %v2396_v43 = vpop.xlane.xlu1 %2395 }
 0x521   : > { %3518 = vrcp.f32 %v2396_v43 }
 0x522   : > { %3520 = vrcp.f32 %v2387_v41 }
 0x523   : > { %3522 = vrcp.f32 %v2393_v1 }
 0x524   : > { %v1331_v44 = vpop.permute.xlu0 %1330  ;;  %v2390_v45 = vpop.xlane.xlu1 %2389 }
 0x525   : > { %v1340_v46 = vsel %vm1338_vm5, %v1331_v44, 0  ;;  %3524 = vrcp.f32 %v2390_v45  ;;  %3450 = vmatprep.subr.msk.bf16.mxu1 %vm1338_vm5, %v1331_v44 }
 0x526   : > { %3396 = vmatpush3.bf16.msra.mxu1 %v1340_v46 }
 0x528   : > { %v2408_v47 = vpop.permute.xlu1 %2407 }
 0x529   : > { %v2416_v48 = vsel %vm1338_vm5, %v2408_v47, 0  ;;  %3398 = vmatmul.mubr.msk.bf16.vlgmr.msra.gmra.mxu1 %vm1219_vm3, %v1328_v36  ;;  %3452 = vmatprep.subr.msk.bf16.mxu1 %vm1338_vm5, %v2408_v47 }
 0x52a   : > { %3408 = vmatpush3.bf16.msra.mxu1 %v2416_v48 }
 0x52b   : > { %3421 = vmatprep.subr.bf16.mxu1 %v3544_v22 }
 0x52e   : > { %v3519_v38 = vpop.eup %3518 }
 0x52f   : > { %v3521_v49 = vpop.eup %3520  ;;  %v2404_v52 = vmul.f32 %v3519_v38, %v3507_v12 }
 0x530   : > { %v3523_v50 = vpop.eup %3522  ;;  %v2398_v53 = vmul.f32 %v3521_v49, %v3505_v21 }
 0x531   : > { %v2402_v9 = vmul.f32 %v3523_v50, %v3503_v19 }
 0x532   : > { %v3525_v51 = vpop.eup %3524 }
 0x533   : > { %v2400_v54 = vmul.f32 %v3525_v51, %v3509_v25  ;;  %v2406_v55 = vpack.c.bf16 %v2404_v52, %v2402_v9 }
 0x535   : > { %v2405_v13 = vpack.c.bf16 %v2400_v54, %v2398_v53 }
 0x537   : > { %3409 = vmatprep.mubr.msk.bf16.mxu1 %vm1219_vm3, %v2405_v13 }
 0x538   : > { %3410 = vmatmul.mubr.msk.bf16.vlgmr.msra.gmra.mxu1 %vm1219_vm3, %v2406_v55 }
 0x539   : > { %3425 = vmatprep.mubr.msk.bf16.mxu1 %vm3545_vm2, %v3544_v22 }
 0x5e9   : > { %v3399_v56 = vpop.f32.mrf.mxu1 }
 0x5ea   : > { %v1500_v59 = vrot.slane %v3399_v56, %v3762_v42  ;;  %v1493_v60 = vcombine.high %v3399_v56, %v3399_v56 }
 0x5eb   : > { %v3884_v57 = vpop.f32.mrf.mxu1 }
 0x5ec   : > { %v1508_v62 = vcombine.high %v1500_v59, %v1500_v59  ;;  %v1507_v0 = vrot.slane %v1493_v60, %v3762_v42  ;;  %v1516_v2 = vrot.slane %v1500_v59, %v3762_v42 }
 0x5ed   : > { %v3400_v58 = vpop.f32.mrf.mxu1 }
 0x5ee   : > { %v1530_v4 = vrot.slane %v1508_v62, %v3762_v42  ;;  %v1509_v7 = vcombine.high %v1507_v0, %v1507_v0  ;;  %v1523_v8 = vrot.slane %v1507_v0, %v3762_v42  ;;  %v1549_v11 = vrot.slane %v3400_v58, %v3762_v42 }
 0x5ef   : > { %v1379_v61 = vpop.f32.mrf.mxu1  ;;  %v1538_v15 = vcombine.high %v1516_v2, %v1516_v2  ;;  %v1542_v23 = vcombine.high %v3400_v58, %v3400_v58 }
 0x5f0   : > { %v1444_v63 = vcombine.high %v1379_v61, %v1379_v61  ;;  %v1540_v17 = vcombine.high %v1530_v4, %v1530_v4  ;;  %v1537_v21 = vrot.slane %v1509_v7, %v3762_v42  ;;  %v1539_v12 = vcombine.high %v1523_v8, %v1523_v8 }
 0x5f1   : > { %v1557_v26 = vcombine.high %v1549_v11, %v1549_v11  ;;  %v1451_v27 = vrot.slane %v1379_v61, %v3762_v42  ;;  %v1689_v18 = vcombine.low %v1530_v4, %v1538_v15  ;;  %v1556_v32 = vrot.slane %v1542_v23, %v3762_v42 }
 0x5f2   : > { %v1458_v6 = vrot.slane %v1444_v63, %v3762_v42  ;;  %v1690_v30 = vcombine.low %v1540_v17, %v1523_v8  ;;  %v1691_v31 = vcombine.low %v1537_v21, %v1539_v12  ;;  %v1565_v35 = vrot.slane %v1549_v11, %v3762_v42 }
 0x5f3   : > { %v1579_v36 = vrot.slane %v1557_v26, %v3762_v42  ;;  %v1459_v37 = vcombine.high %v1451_v27, %v1451_v27  ;;  %v1705_v40 = vrot.slane %v1689_v18, %v3762_v42  ;;  %v1541_v45 = vcombine.high %v1537_v21, %v1537_v21 }
 0x5f4   : > { %v1460_v14 = vcombine.high %v1458_v6, %v1458_v6  ;;  %v3897_v19 = vrot.slane %v1458_v6, %v3762_v42  ;;  %v1712_v44 = vrot.slane %v1690_v30, %v3762_v42  ;;  %v1558_v48 = vcombine.high %v1556_v32, %v1556_v32 }
 0x5f5   : > { %v1587_v51 = vcombine.high %v1565_v35, %v1565_v35  ;;  %v1588_v52 = vcombine.high %v1579_v36, %v1579_v36  ;;  %v1481_v53 = vrot.slane %v1459_v37, %v3762_v42  ;;  %v1572_v58 = vrot.slane %v1556_v32, %v3762_v42 }
 0x5f6   : > { %v3900_v20 = vrot.slane %v1460_v14, %v3762_v42  ;;  %v3928_v59 = vcombine.low %v1541_v45, %v1565_v35  ;;  %v3932_v62 = vrot.slane %v1558_v48, %v3762_v42  ;;  %v1467_v63 = vrot.slane %v1451_v27, %v3762_v42 }
 0x5f7   : > { %v3935_v4 = vcombine.low %v1579_v36, %v1587_v51  ;;  %v3937_v6 = vcombine.low %v1588_v52, %v1572_v58 }
 0x5f8   : > { %v3411_v3 = vpop.f32.mrf.mxu1  ;;  %v1640_v28 = vcombine.low %v3897_v19, %v3900_v20  ;;  %v1492_v46 = vcombine.high %v3900_v20, %v3900_v20  ;;  %v3300_v12 = vcombine.high %v1467_v63, %v1481_v53 }
 0x5f9   : > { %v2576_v5 = vrot.slane %v3411_v3, %v3762_v42  ;;  %v2569_v16 = vcombine.high %v3411_v3, %v3411_v3  ;;  %v1753_v58 = vrot.slane %v3935_v4, %v3762_v42 }
 0x5fa   : > { %v3893_v10 = vpop.f32.mrf.mxu1  ;;  %v1688_v60 = vcombine.low %v1492_v46, %v1516_v2 }
 0x5fb   : > { %v2584_v24 = vcombine.high %v2576_v5, %v2576_v5  ;;  %v2583_v29 = vrot.slane %v2569_v16, %v3762_v42  ;;  %v2592_v38 = vrot.slane %v2576_v5, %v3762_v42  ;;  %v1638_v5 = vcombine.low %v1467_v63, %v1481_v53 }
 0x5fc   : > { %v3412_v25 = vpop.f32.mrf.mxu1  ;;  %v1698_v21 = vrot.slane %v1688_v60, %v3762_v42 }
 0x5fd   : > { %v2606_v33 = vrot.slane %v2584_v24, %v3762_v42  ;;  %v2618_v39 = vcombine.high %v3412_v25, %v3412_v25  ;;  %v2585_v1 = vcombine.high %v2583_v29, %v2583_v29  ;;  %v2599_v41 = vrot.slane %v2583_v29, %v3762_v42 }
 0x5fe   : > { %v3909_v34 = vpop.f32.mrf.mxu1  ;;  %v2625_v43 = vrot.slane %v3412_v25, %v3762_v42  ;;  %v2614_v0 = vcombine.high %v2592_v38, %v2592_v38  ;;  %v1719_v25 = vrot.slane %v1691_v31, %v3762_v42  ;;  %v1720_v29 = vcombine.low %v1698_v21, %v1705_v40 }
 0x5ff   : > { %v2520_v47 = vcombine.high %v3909_v34, %v3909_v34  ;;  %v2616_v49 = vcombine.high %v2606_v33, %v2606_v33  ;;  %v2632_v54 = vrot.slane %v2618_v39, %v3762_v42  ;;  %v2613_v9 = vrot.slane %v2585_v1, %v3762_v42 }
 0x600   : > { %v2633_v50 = vcombine.high %v2625_v43, %v2625_v43  ;;  %v2615_v13 = vcombine.high %v2599_v41, %v2599_v41  ;;  %v2641_v55 = vrot.slane %v2625_v43, %v3762_v42  ;;  %v2765_v23 = vcombine.low %v2606_v33, %v2614_v0 }
 0x601   : > { %v2534_v61 = vrot.slane %v2520_v47, %v3762_v42  ;;  %v2766_v3 = vcombine.low %v2616_v49, %v2599_v41  ;;  %v2634_v7 = vcombine.high %v2632_v54, %v2632_v54  ;;  %v2617_v14 = vcombine.high %v2613_v9, %v2613_v9 }
 0x602   : > { %v2655_v56 = vrot.slane %v2633_v50, %v3762_v42  ;;  %v2767_v11 = vcombine.low %v2613_v9, %v2615_v13  ;;  %v2663_v15 = vcombine.high %v2641_v55, %v2641_v55  ;;  %v2648_v2 = vrot.slane %v2632_v54, %v3762_v42 }
 0x603   : > { %v2536_v16 = vcombine.high %v2534_v61, %v2534_v61  ;;  %v2550_v17 = vrot.slane %v2534_v61, %v3762_v42  ;;  %v2788_v24 = vrot.slane %v2766_v3, %v3762_v42  ;;  %v2662_v26 = vrot.slane %v2634_v7, %v3762_v42 }
 0x604   : > { %v2664_v8 = vcombine.high %v2655_v56, %v2655_v56  ;;  %v2813_v30 = vcombine.low %v2617_v14, %v2641_v55  ;;  %v2814_v32 = vcombine.low %v2655_v56, %v2663_v15  ;;  %v1721_v35 = vcombine.low %v1712_v44, %v1719_v25 }
 0x605   : > { %v2564_v18 = vrot.slane %v2536_v16, %v3762_v42  ;;  %v2795_v36 = vrot.slane %v2767_v11, %v3762_v42  ;;  %v2566_v37 = vcombine.high %v2550_v17, %v2550_v17  ;;  %v1728_v33 = vrot.slane %v1720_v29, %v3762_v42 }
 0x606   : > { %v2815_v27 = vcombine.low %v2664_v8, %v2648_v2  ;;  %v1490_v41 = vcombine.high %v3897_v19, %v3897_v19  ;;  %v1647_v31 = vrot.slane %v1638_v5, %v3762_v42  ;;  %v1654_v43 = vrot.slane %v3300_v12, %v3762_v42 }
 0x607   : > { %v2568_v39 = vcombine.high %v2564_v18, %v2564_v18  ;;  %v2716_v1 = vcombine.low %v2550_v17, %v2564_v18  ;;  %v1735_v45 = vrot.slane %v1721_v35, %v3762_v42  ;;  %v1661_v40 = vrot.slane %v1640_v28, %v3762_v42 }
 0x608   : > { %v2836_v44 = vrot.slane %v2815_v27, %v3762_v42  ;;  %v2781_v48 = vrot.slane %v2765_v23, %v3762_v42  ;;  %v2822_v49 = vrot.slane %v2813_v30, %v3762_v42  ;;  %v2843_v50 = vrot.slane %v2662_v26, %v3762_v42 }
 0x609   : > { %v3959_v46 = vrot.slane %v2716_v1, %v3762_v42  ;;  %v2764_v47 = vcombine.low %v2568_v39, %v2592_v38  ;;  %v1736_v51 = vcombine.low %v1728_v33, %v1735_v45  ;;  %v2829_v52 = vrot.slane %v2814_v32, %v3762_v42 }
 0x60a   : > { %v3966_v53 = vrot.slane %v2566_v37, %v3762_v42  ;;  %v2797_v20 = vcombine.low %v2788_v24, %v2795_v36  ;;  %v1668_v28 = vrot.slane %v1490_v41, %v3762_v42  ;;  %v1669_v54 = vcombine.low %v1647_v31, %v1654_v43 }
 0x60b   : > { %v2774_v19 = vrot.slane %v2764_v47, %v3762_v42  ;;  %1785 = vrot.lane.b32.xlu0 %v1736_v51, %s3553_s29  ;;  %v1760_v38 = vrot.slane %v3937_v6, %v3762_v42  ;;  %v2845_v13 = vcombine.low %v2836_v44, %v2843_v50  ;;  %v1746_v56 = vrot.slane %v3928_v59, %v3762_v42 }
 0x60c   : > { %v2746_v55 = vcombine.low %v3959_v46, %v3966_v53  ;;  %v1670_v60 = vcombine.low %v1661_v40, %v1668_v28  ;;  %v1767_v61 = vrot.slane %v3932_v62, %v3762_v42  ;;  %v2811_v0 = vrot.slane %v2797_v20, %v3762_v42 }
 0x60d   : > { %v2796_v9 = vcombine.low %v2774_v19, %v2781_v48  ;;  %v2844_v3 = vcombine.low %v2822_v49, %v2829_v52  ;;  %v3983_v6 = vrot.slane %v1669_v54, %v3762_v42  ;;  %v2859_v59 = vrot.slane %v2845_v13, %v3762_v42 }
 0x60e   : > { %v3986_v7 = vrot.slane %v1670_v60, %v3762_v42  ;;  %v1769_v5 = vcombine.low %v1760_v38, %v1767_v61  ;;  %v1768_v11 = vcombine.low %v1746_v56, %v1753_v58  ;;  %v1395_v17 = vcombine.high %v3884_v57, %v3884_v57 }
 0x60f   : > { %v2804_v63 = vrot.slane %v2796_v9, %v3762_v42  ;;  %v2852_v62 = vrot.slane %v2844_v3, %v3762_v42  ;;  %v1402_v12 = vrot.slane %v3884_v57, %v3762_v42  ;;  %v2471_v23 = vcombine.high %v3893_v10, %v3893_v10 }
 0x610   : > { %v1685_v4 = vcombine.low %v3983_v6, %v3986_v7  ;;  %v1783_v15 = vrot.slane %v1769_v5, %v3762_v42  ;;  %v1776_v2 = vrot.slane %v1768_v11, %v3762_v42  ;;  %v1409_v21 = vrot.slane %v1395_v17, %v3762_v42  ;;  %v3317_v6 = vld [vmem:[%s4142_s9] ss:$0 sm:$0xff] }
 0x611   : > { %v2812_v8 = vcombine.low %v2804_v63, %v2811_v0  ;;  %v2860_v14 = vcombine.low %v2852_v62, %v2859_v59  ;;  %v1410_v25 = vcombine.high %v1402_v12, %v1402_v12  ;;  %v2485_v26 = vrot.slane %v2471_v23, %v3762_v42  ;;  %v3476_v62 = vld [vmem:[%s4141_s8 + $0x8] sm:$0xff]  }
 0x612   : > { %v1784_v16 = vcombine.low %v1776_v2, %v1783_v15  ;;  %v1411_v24 = vcombine.high %v1409_v21, %v1409_v21  ;;  %v2478_v18 = vrot.slane %v3893_v10, %v3762_v42  ;;  %v1425_v29 = vrot.slane %v1409_v21, %v3762_v42  ;;  %3414 = vmatpush3.bf16.msra.mxu0 %v3476_v62  ;;  %v3477_v15 = vld [vmem:[%s4141_s8] sm:$0xff]   ;;  %v3480_v62 = vld [vmem:[%s4146_s13 + $0x38] sm:$0xff]  }
 0x613   : > { %2861 = vrot.lane.b32.xlu1 %v2812_v8, %s3553_s29  ;;  %v1432_v30 = vrot.slane %v1410_v25, %v3762_v42  ;;  %v2487_v32 = vcombine.high %v2485_v26, %v2485_v26  ;;  %v1418_v35 = vrot.slane %v1402_v12, %v3762_v42  ;;  %v2527_v39 = vrot.slane %v3909_v34, %v3762_v42 }
 0x614   : > { %v1439_v27 = vrot.slane %v1411_v24, %v3762_v42  ;;  %v2486_v37 = vcombine.high %v2478_v18, %v2478_v18  ;;  %v2501_v43 = vrot.slane %v2485_v26, %v3762_v42  ;;  %v2494_v48 = vrot.slane %v2478_v18, %v3762_v42  ;;  %3415 = vmatprep.subr.bf16.mxu0 %v3544_v22 }
 0x615   : > { %v1589_v1 = vcombine.low %v1418_v35, %v1432_v30  ;;  %v3298_v33 = vcombine.high %v1418_v35, %v1432_v30  ;;  %v2515_v41 = vrot.slane %v2487_v32, %v3762_v42  ;;  %v2535_v40 = vcombine.high %v2527_v39, %v2527_v39  ;;  %v3534_v35 = vld [vmem:[%s3652_s24] sm:$0xff] }
 0x616   : > { %v1591_v57 = vcombine.low %v1425_v29, %v1439_v27  ;;  %v3299_v36 = vcombine.high %v1425_v29, %v1439_v27  ;;  %v2508_v45 = vrot.slane %v2486_v37, %v3762_v42  ;;  %v2543_v38 = vrot.slane %v2527_v39, %v3762_v42  ;;  %3416 = vmatpush3.bf16.msra.mxu0 %v3477_v15  ;;  %v3483_v15 = vld [vmem:[%s4146_s13 + $0x20] sm:$0xff]  }
 0x617   : > { %2863 = vrot.lane.b32.xlu1 %v2860_v14, %s3553_s29  ;;  %v1599_v44 = vrot.slane %v1589_v1, %v3762_v42  ;;  %v1606_v47 = vrot.slane %v3298_v33, %v3762_v42  ;;  %v2667_v34 = vcombine.low %v2501_v43, %v2515_v41  ;;  %v3315_v49 = vcombine.high %v2501_v43, %v2515_v41  ;;  %v3535_v33 = vld [vmem:[%s3652_s24 + $0x8] sm:$0x7f] }
 0x618   : > { %v1613_v31 = vrot.slane %v1591_v57, %v3762_v42  ;;  %v1620_v10 = vrot.slane %v3299_v36, %v3762_v42  ;;  %v2665_v51 = vcombine.low %v2494_v48, %v2508_v45  ;;  %v3314_v52 = vcombine.high %v2494_v48, %v2508_v45  ;;  %3429 = vmatprep.subr.bf16.mxu0 %v3544_v22 }
 0x619   : > { %v2557_v19 = vrot.slane %v2535_v40, %v3762_v42  ;;  %v1621_v20 = vcombine.low %v1599_v44, %v1606_v47  ;;  %v2689_v28 = vrot.slane %v2667_v34, %v3762_v42  ;;  %v2696_v54 = vrot.slane %v3315_v49, %v3762_v42 }
 0x61a   : > { %v1622_v50 = vcombine.low %v1613_v31, %v1620_v10  ;;  %v2675_v13 = vrot.slane %v2665_v51, %v3762_v42  ;;  %v2682_v56 = vrot.slane %v3314_v52, %v3762_v42  ;;  %v2760_v21 = vrot.slane %v2746_v55, %v3762_v42  ;;  %v3478_v51 = vld [vmem:[%s4144_s11 + $0x8] sm:$0xff]   ;;  %v3479_v52 = vld [vmem:[%s4144_s11] sm:$0xff]  }
 0x61b   : > { %1787 = vrot.lane.b32.xlu1 %v1784_v16, %s3553_s29  ;;  %v2714_v58 = vcombine.low %v2543_v38, %v2557_v19  ;;  %v3316_v60 = vcombine.high %v2543_v38, %v2557_v19  ;;  %v1629_v61 = vrot.slane %v1621_v20, %v3762_v42  ;;  %v2698_v63 = vcombine.low %v2689_v28, %v2696_v54 }
 0x61c   : > { %v1636_v9 = vrot.slane %v1622_v50, %v3762_v42  ;;  %v2697_v3 = vcombine.low %v2675_v13, %v2682_v56  ;;  %3422 = vmatpush3.bf16.msra.mxu1 %v3478_v51 }
 0x61d   : > { %v2723_v8 = vrot.slane %v2714_v58, %v3762_v42  ;;  %v2730_v59 = vrot.slane %v3316_v60, %v3762_v42  ;;  %v2712_v14 = vrot.slane %v2698_v63, %v3762_v42  ;;  %3423 = vmatprep.subr.bf16.mxu1 %v3544_v22  ;;  %v3321_v58 = vld [vmem:[%s4143_s10] ss:$0 sm:$0xff] }
 0x61e   : > { %v1637_v0 = vcombine.low %v1629_v61, %v1636_v9  ;;  %v2705_v16 = vrot.slane %v2697_v3, %v3762_v42 }
 0x61f   : > { %v2745_v2 = vcombine.low %v2723_v8, %v2730_v59 }
 0x620   : > { %v2713_v17 = vcombine.low %v2705_v16, %v2712_v14  ;;  %3424 = vmatpush3.bf16.msra.mxu1 %v3479_v52  ;;  %v3482_v14 = vld [vmem:[%s4146_s13 + $0x28] sm:$0xff]   ;;  %v3485_v16 = vld [vmem:[%s4146_s13 + $0x10] sm:$0xff]  }
 0x621   : > { %v2753_v24 = vrot.slane %v2745_v2, %v3762_v42  ;;  %v3484_v2 = vld [vmem:[%s4146_s13 + $0x18] sm:$0xff]  }
 0x623   : > { %v2761_v25 = vcombine.low %v2753_v24, %v2760_v21  ;;  %v3487_v21 = vld [vmem:[%s4146_s13] sm:$0xff]  }
 0x67d   : > { %v1786_v5 = vpop.permute.xlu0 %1785 }
 0x67e   : > { %v1791_v11 = vsel %vm1219_vm3, %v1637_v0, %v1786_v5  ;;  %v3322_v0 = vld [vmem:[%s4143_s10 + $0x1] ss:$0 sm:$0xff] }
 0x67f   : > { %1794 = vst.msk [vmem:[#allocation2] sm:$0xff] %vm1793_vm6, %v1791_v11  ;;  %v3481_v11 = vld [vmem:[%s4146_s13 + $0x30] sm:$0xff]  }
 0x685   : > { %v2862_v12 = vpop.permute.xlu1 %2861 }
 0x686   : > { %v2867_v23 = vsel %vm1219_vm3, %v2713_v17, %v2862_v12  ;;  %v3486_v17 = vld [vmem:[%s4146_s13 + $0x8] sm:$0xff]   ;;  %v3323_v12 = vld [vmem:[%s4145_s12] ss:$0 sm:$0xff] }
 0x687   : > { %2871 = vrot.lane.b32.xlu0 %v2867_v23, %s3554_s22 }
 0x689   : > { %v2864_v26 = vpop.permute.xlu1 %2863 }
 0x68a   : > { %v2868_v27 = vsel %vm1219_vm3, %v2761_v25, %v2864_v26 }
 0x68b   : > { %2873 = vrot.lane.b32.xlu1 %v2868_v27, %s3554_s22 }
 0x68d   : > { %v1788_v18 = vpop.permute.xlu1 %1787 }
 0x68e   : > { %v1792_v46 = vsel %vm1219_vm3, %v1685_v4, %v1788_v18 }
 0x68f   : > { %1796 = vst.msk [vmem:[#allocation2 + $0x8] sm:$0x7f] %vm1795_vm7, %v1792_v46 }
 0x6f9   : > { %v2872_v53 = vpop.permute.xlu0 %2871 }
 0x6fa   : > { %2878 = vst.msk [vmem:[#allocation2] sm:$0xff] %vm2877_vm8, %v2872_v53 }
 0x6fd   : > { %v2874_v42 = vpop.permute.xlu1 %2873 }
 0x6fe   : > { %2880 = vst.msk [vmem:[#allocation2 + $0x8] sm:$0x7f] %vm2879_vm9, %v2874_v42 }
 0x701   : > { %v2881_v55 = vld [vmem:[#allocation2] sm:$0xff] }
 0x705   : > { %v2882_v29 = vld [vmem:[#allocation2 + $0x8] sm:$0x7f] }
 0x706   : > { %v2883_v30 = vpack.c.bf16 %v2882_v29, %v2881_v55 }
 0x708   : > { %3418 = vmatmul.mubr.msk.bf16.vlgmr.msra.gmra.mxu0 %vm518_vm0, %v2883_v30 }
 0x709   : > { %3445 = vmatprep.mubr.msk.bf16.mxu0 %vm3545_vm2, %v3544_v22  ;;  %3430 = vmatpush3.bf16.msra.mxu0 %v3480_v62 }
 0x70a   : > { %3431 = vmatprep.subr.bf16.mxu0 %v3544_v22 }
 0x70d   : > { %3432 = vmatpush3.bf16.msra.mxu0 %v3481_v11 }
 0x70e   : > { %3433 = vmatprep.subr.bf16.mxu0 %v3544_v22 }
 0x711   : > { %3434 = vmatpush3.bf16.msra.mxu0 %v3482_v14 }
 0x712   : > { %3435 = vmatprep.subr.bf16.mxu0 %v3544_v22 }
 0x715   : > { %3436 = vmatpush3.bf16.msra.mxu0 %v3483_v15 }
 0x716   : > { %3437 = vmatprep.subr.bf16.mxu0 %v3544_v22 }
 0x719   : > { %3438 = vmatpush3.bf16.msra.mxu0 %v3484_v2 }
 0x71a   : > { %3439 = vmatprep.subr.bf16.mxu0 %v3544_v22 }
 0x71d   : > { %3440 = vmatpush3.bf16.msra.mxu0 %v3485_v16 }
 0x71e   : > { %3441 = vmatprep.subr.bf16.mxu0 %v3544_v22 }
 0x721   : > { %3442 = vmatpush3.bf16.msra.mxu0 %v3486_v17 }
 0x722   : > { %3443 = vmatprep.subr.bf16.mxu0 %v3544_v22 }
 0x725   : > { %3444 = vmatpush3.bf16.msra.mxu0 %v3487_v21 }
 0x7c8   : > { %v2944_v7 = vpop.f32.mrf.mxu0 }
 0x7c9   : > { %v2945_v4 = vadd.f32 %v3317_v6, %v2944_v7 }
 0x7ca   : > { %v3419_v32 = vpop.f32.mrf.mxu0 }
 0x7cb   : > { %v4057_v57 = vadd.f32 %v3534_v35, %v2945_v4 }
 0x7cc   : > { %v2947_v36 = vpop.f32.mrf.mxu0 }
 0x7cd   : > { %v2948_v37 = vadd.f32 %v3317_v6, %v2947_v36  ;;  %v2955_v39 = vsel %vm518_vm0, %v4057_v57, 0.0 }
 0x7ce   : > { %2956 = vadd.xlane.f32.xlu0 %v2955_v39  ;;  %v3420_v1 = vpop.f32.mrf.mxu0 }
 0x7cf   : > { %v4062_v41 = vadd.f32 %v3535_v33, %v2948_v37 }
 0x7d1   : > { %v2958_v31 = vsel %vm522_vm1, %v4062_v41, 0.0 }
 0x7d2   : > { %2959 = vadd.xlane.f32.xlu1 %v2958_v31 }
 0x857   : > { %v2957_v10 = vpop.xlane.xlu0 %2956 }
 0x858   : > { %v2961_v43 = vmul.f32 0.03125, %v2957_v10 }
 0x85a   : > { %v2963_v45 = vsub.f32 %v4057_v57, %v2961_v43  ;;  %v3327_v43 = vld [vmem:[%s4147_s14] ss:$0 sm:$0xff] }
 0x85b   : > { %v2960_v40 = vpop.xlane.xlu1 %2959 }
 0x85c   : > { %v2962_v44 = vmul.f32 0.03125, %v2960_v40  ;;  %v2965_v47 = vmul.f32 %v2963_v45, %v2963_v45 }
 0x85e   : > { %v2964_v48 = vsub.f32 %v4062_v41, %v2962_v44  ;;  %v2967_v34 = vsel %vm518_vm0, %v2965_v47, 0.0 }
 0x85f   : > { %2968 = vadd.xlane.f32.xlu0 %v2967_v34 }
 0x860   : > { %v2966_v49 = vmul.f32 %v2964_v48, %v2964_v48 }
 0x862   : > { %v2970_v50 = vsel %vm522_vm1, %v2966_v49, 0.0 }
 0x863   : > { %2971 = vadd.xlane.f32.xlu0 %v2970_v50 }
 0x8e8   : > { %v2969_v19 = vpop.xlane.xlu0 %2968 }
 0x8e9   : > { %v2973_v20 = vmul.f32 0.03125, %v2969_v19 }
 0x8eb   : > { %v2975_v28 = vadd.f32 1e-05, %v2973_v20 }
 0x8ec   : > { %v2972_v54 = vpop.xlane.xlu0 %2971 }
 0x8ed   : > { %3526 = vrsqrt.f32 %v2975_v28  ;;  %v2974_v38 = vmul.f32 0.03125, %v2972_v54 }
 0x8ef   : > { %v2976_v9 = vadd.f32 1e-05, %v2974_v38 }
 0x8f1   : > { %3528 = vrsqrt.f32 %v2976_v9 }
 0x8fa   : > { %v3527_v13 = vpop.eup %3526 }
 0x8fb   : > { %v2979_v56 = vmul.f32 %v3527_v13, %v2963_v45 }
 0x8fd   : > { %v2985_v63 = vmul.f32 %v3321_v58, %v2979_v56 }
 0x8fe   : > { %v3529_v60 = vpop.eup %3528 }
 0x8ff   : > { %v2980_v61 = vmul.f32 %v3529_v60, %v2964_v48  ;;  %v2991_v8 = vadd.f32 %v3322_v0, %v2985_v63 }
 0x901   : > { %v2986_v3 = vmul.f32 %v3321_v58, %v2980_v61 }
 0x903   : > { %v2992_v59 = vadd.f32 %v3322_v0, %v2986_v3 }
 0x905   : > { %v2993_v5 = vpack.c.bf16 %v2992_v59, %v2991_v8 }
 0x907   : > { %3426 = vmatmul.mubr.msk.bf16.vlgmr.msra.gmra.mxu1 %vm518_vm0, %v2993_v5 }
 0x9c7   : > { %v3054_v23 = vpop.f32.mrf.mxu1 }
 0x9c8   : > { %v3055_v24 = vadd.f32 %v3323_v12, %v3054_v23 }
 0x9c9   : > { %v3427_v25 = vpop.f32.mrf.mxu1 }
 0x9ca   : > { %v3061_v26 = vmul.f32 %v3055_v24, %v3055_v24 }
 0x9cb   : > { %v3057_v27 = vpop.f32.mrf.mxu1 }
 0x9cc   : > { %v3063_v18 = vmul.f32 %v3061_v26, %v3055_v24  ;;  %v3058_v46 = vadd.f32 %v3323_v12, %v3057_v27 }
 0x9cd   : > { %v3428_v53 = vpop.f32.mrf.mxu1 }
 0x9ce   : > { %v3065_v42 = vmul.f32 0.044715, %v3063_v18  ;;  %v3062_v55 = vmul.f32 %v3058_v46, %v3058_v46 }
 0x9d0   : > { %v3067_v29 = vadd.f32 %v3065_v42, %v3055_v24  ;;  %v3064_v30 = vmul.f32 %v3062_v55, %v3058_v46 }
 0x9d2   : > { %v3069_v6 = vmul.f32 0.7978846, %v3067_v29  ;;  %v3066_v7 = vmul.f32 0.044715, %v3064_v30 }
 0x9d4   : > { %3530 = vtanh.f32 %v3069_v6  ;;  %v3068_v22 = vadd.f32 %v3066_v7, %v3058_v46 }
 0x9d6   : > { %v3070_v4 = vmul.f32 0.7978846, %v3068_v22 }
 0x9d8   : > { %3532 = vtanh.f32 %v3070_v4 }
 0x9e1   : > { %v3531_v32 = vpop.eup %3530 }
 0x9e2   : > { %v3073_v35 = vadd.f32 1.0, %v3531_v32 }
 0x9e4   : > { %v3075_v37 = vmul.f32 0.5, %v3073_v35 }
 0x9e5   : > { %v3533_v36 = vpop.eup %3532 }
 0x9e6   : > { %v3074_v39 = vadd.f32 1.0, %v3533_v36  ;;  %v3077_v33 = vmul.f32 %v3075_v37, %v3055_v24 }
 0x9e8   : > { %v3076_v1 = vmul.f32 0.5, %v3074_v39 }
 0x9ea   : > { %v3078_v31 = vmul.f32 %v3076_v1, %v3058_v46 }
 0x9ec   : > { %v3079_v10 = vpack.c.bf16 %v3078_v31, %v3077_v33 }
 0x9ee   : > { %3446 = vmatmul.mubr.bf16.vlgmr.msra.gmra.mxu0 %v3079_v10 }
 0xaae   : > { %v3185_v45 = vpop.f32.mrf.mxu0 }
 0xaaf   : > { %v3186_v40 = vadd.f32 %v3327_v43, %v3185_v45 }
 0xab0   : > { %v3447_v44 = vpop.f32.mrf.mxu0 }
 0xab1   : > { %v3192_v47 = vadd.f32 %v3186_v40, %v4057_v57 }
 0xab2   : > { %v3188_v48 = vpop.f32.mrf.mxu0 }
 0xab3   : > { %3194 = vst.msk [vmem:[%s511_s16] sm:$0xff] %vm518_vm0, %v3192_v47  ;;  %v3189_v34 = vadd.f32 %v3327_v43, %v3188_v48 }
 0xab4   : > { %v3448_v49 = vpop.f32.mrf.mxu0 }
 0xab5   : > { %v3193_v50 = vadd.f32 %v3189_v34, %v4062_v41 }
 0xab7   : > { %3195 = vst.msk [vmem:[%s511_s16 + $0x8] sm:$0x7f] %vm522_vm1, %v3193_v50 }
 0xab8 PF: > { %s25_s18 = sadd.s32 1, %s3542_s18  }
 0xab9   : > { %p22_p4 = scmp.ge.s32.totalorder %s25_s18, 4  }
 0xabb   :  { %24 = sbr.rel (!%p22_p4) target bundleno = 1 (0x1), region = 113 }

</bundles_post_ra>
